<compile_context>
chip_gen: v7x
topology: tpu7x:2x2x1
jax: 0.10.0
libtpu: 0.0.40
codegen_flags: <defaults>
</compile_context>

<pallas_src>
import functools

import jax
import jax.numpy as jnp
from jax import lax
from jax.experimental import pallas as pl
from jax.experimental.pallas import tpu as pltpu  # noqa: F401  (kept for TPU-specific tuning hooks)

# ----------------------------- configuration --------------------------------
B = 2              # batch
C = 14             # eeg_channels (forced to 14 by the (14, 1) conv kernel)
T = 16             # timesteps
D = 32             # d_model
NHEAD = 2          # must divide C
DH = C // NHEAD    # 7
DP = 8             # per-head dim padded to 8 (zero-padded, exact)
QKVW = NHEAD * DP  # 16
F = 64             # dim_feedforward
NCLS = 10
NCLS_PAD = 16      # logits lane-padded (padded cols are exactly zero)
ROWS = B * T       # 32 stacked rows, interleaved as row = t*B + b
LN_EPS = 1e-5
BN_EPS = 1e-5
DTYPE = jnp.float32

# --- f32 parameter blob layout: (PF_ROWS, LF) --------------------------------
LF = 256
PE_OFF = 0        # (ROWS, C)   positional encoding, batch-interleaved
BQKV_OFF = 32     # (1, 3*QKVW) fused qkv bias (scale folded into q part)
BO_OFF = 33       # (1, C)      out-proj bias
G1_OFF = 34       # (1, C)      LayerNorm1 gamma
B1_OFF = 35       # (1, C)      LayerNorm1 beta
B1REP_OFF = 36    # (1, T*T)    conv1 bias (BN folded), repeated per lane
B2_OFF = 37       # (1, D)      conv2 bias (BN folded)
BF1_OFF = 38      # (1, F)      ff linear1 bias
BF2_OFF = 39      # (1, D)      ff linear2 bias
G2_OFF = 40       # (1, D)      LayerNorm2 gamma
B2L_OFF = 41      # (1, D)      LayerNorm2 beta
BC_OFF = 42       # (1, NCLS)   classifier bias
PF_ROWS = 48

# --- bf16 weight blob layout: (BW_ROWS, LW) -----------------------------------
LW = 64
WQKV_OFF = 0      # (C, 3*QKVW)  fused q|k|v weights, heads padded to 8
WO_OFF = 16       # (QKVW, C)    out-proj weights (zero rows at padded dims)
W2_OFF = 32       # (T*T, D)     conv2 as flattened matmul (BN folded)
WF1_OFF = 288     # (D, F)       ff linear1
WF2_OFF = 320     # (F, D)       ff linear2
WC_OFF = 384      # (D, NCLS_PAD) classifier (zero-padded cols)
BW_ROWS = 416


# ----------------------------- fused kernel ----------------------------------
def fused_eeg_kernel(x_ref, pf_ref, bw_ref, k1_ref, out_ref):
    # ---- positional encoding (whole interleaved batch) ----------------------
    xb = x_ref[...] + pf_ref[PE_OFF:PE_OFF + ROWS, 0:C]           # (32, 14) f32
    xb16 = xb.astype(jnp.bfloat16)

    # ---- fused Q/K/V projection: one wide matmul -----------------------------
    w_qkv = bw_ref[WQKV_OFF:WQKV_OFF + C, 0:3 * QKVW]             # (14, 48) bf16
    qkv = jnp.dot(xb16, w_qkv, preferred_element_type=jnp.float32) \
        + pf_ref[BQKV_OFF:BQKV_OFF + 1, 0:3 * QKVW]               # (32, 48) f32

    # ---- same-batch additive mask (rows interleaved: row = t*B + b) ---------
    r_i = lax.broadcasted_iota(jnp.int32, (ROWS, ROWS), 0)
    c_i = lax.broadcasted_iota(jnp.int32, (ROWS, ROWS), 1)
    mask = jnp.where((r_i % B) == (c_i % B), 0.0, -1e30).astype(jnp.float32)

    # ---- per-head attention on the full 32-row stack --------------------------
    ctxs = []
    for h in range(NHEAD):                                        # static unroll
        q = qkv[:, h * DP:(h + 1) * DP].astype(jnp.bfloat16)          # (32, 8)
        k = qkv[:, QKVW + h * DP:QKVW + (h + 1) * DP].astype(jnp.bfloat16)
        v = qkv[:, 2 * QKVW + h * DP:2 * QKVW + (h + 1) * DP].astype(jnp.bfloat16)
        s = lax.dot_general(q, k, (((1,), (1,)), ((), ())),
                            preferred_element_type=jnp.float32) + mask  # (32, 32)
        m = jnp.max(s, axis=-1, keepdims=True)
        p = jnp.exp(s - m)
        a = p * pl.reciprocal(jnp.sum(p, axis=-1, keepdims=True), approx=True)
        ctxs.append(jnp.dot(a.astype(jnp.bfloat16), v,
                            preferred_element_type=jnp.float32))        # (32, 8)
    ctx_cat = jnp.concatenate(ctxs, axis=1).astype(jnp.bfloat16)        # (32, 16)

    # ---- single output projection + residual + LayerNorm1 ---------------------
    wo = bw_ref[WO_OFF:WO_OFF + QKVW, 0:C]                              # (16, 14)
    attn = jnp.dot(ctx_cat, wo, preferred_element_type=jnp.float32) \
        + pf_ref[BO_OFF:BO_OFF + 1, 0:C]                                # (32, 14)
    acc = xb + attn
    mu = jnp.mean(acc, axis=-1, keepdims=True)
    dv = acc - mu
    var = jnp.mean(dv * dv, axis=-1, keepdims=True)
    y1 = dv * lax.rsqrt(var + LN_EPS) * pf_ref[G1_OFF:G1_OFF + 1, 0:C] \
        + pf_ref[B1_OFF:B1_OFF + 1, 0:C]                                # (32, 14)
    y1b = y1.astype(jnp.bfloat16)

    # ---- conv1 on the `.view(B,1,C,T)` flat-reinterpreted tensor --------------
    # Exact flat-view math via the pre-permuted bf16 weight k1 (T, C, T*T):
    #   out1_flat[b] = b1rep + sum_t y1[(t,b) row] @ k1[t]
    # Rows for timestep t are the contiguous, aligned pair y1b[t*B : t*B+B].
    acc1 = jnp.zeros((B, T * T), jnp.float32)
    for t in range(T):                                             # static unroll
        acc1 = acc1 + jnp.dot(y1b[t * B:(t + 1) * B, :], k1_ref[t],
                              preferred_element_type=jnp.float32)
    r1 = jnp.maximum(acc1 + pf_ref[B1REP_OFF:B1REP_OFF + 1, 0:T * T], 0.0)  # (2, 256)

    # ---- conv2 (flattened matmul, BN folded) + ReLU = Flatten output ----------
    w2 = bw_ref[W2_OFF:W2_OFF + T * T, 0:D]                        # (256, 32) bf16
    cflat = jnp.maximum(
        jnp.dot(r1.astype(jnp.bfloat16), w2, preferred_element_type=jnp.float32)
        + pf_ref[B2_OFF:B2_OFF + 1, 0:D], 0.0)                     # (2, 32)

    # ---- feed-forward (Dropout = identity in eval) ------------------------------
    wf1 = bw_ref[WF1_OFF:WF1_OFF + D, 0:F]
    h1 = jnp.maximum(
        jnp.dot(cflat.astype(jnp.bfloat16), wf1, preferred_element_type=jnp.float32)
        + pf_ref[BF1_OFF:BF1_OFF + 1, 0:F], 0.0)                   # (2, 64)
    wf2 = bw_ref[WF2_OFF:WF2_OFF + F, 0:D]
    ff = jnp.dot(h1.astype(jnp.bfloat16), wf2, preferred_element_type=jnp.float32) \
        + pf_ref[BF2_OFF:BF2_OFF + 1, 0:D]                         # (2, 32)

    # ---- residual + LayerNorm2 ---------------------------------------------------
    y = ff + cflat
    mu2 = jnp.mean(y, axis=-1, keepdims=True)
    d2 = y - mu2
    var2 = jnp.mean(d2 * d2, axis=-1, keepdims=True)
    z = d2 * lax.rsqrt(var2 + LN_EPS) * pf_ref[G2_OFF:G2_OFF + 1, 0:D] \
        + pf_ref[B2L_OFF:B2L_OFF + 1, 0:D]                         # (2, 32)

    # ---- classifier + single merged, lane-padded output store --------------------
    wc = bw_ref[WC_OFF:WC_OFF + D, 0:NCLS_PAD]
    logits = jnp.dot(z.astype(jnp.bfloat16), wc, preferred_element_type=jnp.float32) \
        + pf_ref[BC_OFF:BC_OFF + 1, 0:NCLS_PAD]                    # (2, 16)
    out_ref[...] = jnp.concatenate([z, logits], axis=1)            # (2, 48)


# ----------------------------- wrapper ----------------------------------------
def eeg_encoder_forward(x, params, classification=False):
    """x: (B, C, T) float32, mirroring the torch input layout."""
    # torch `.view(-1, T, C)` is a row-major reinterpretation; additionally
    # interleave the batch (row = t*B + b) so conv1 reads aligned row pairs.
    x2d = x.reshape(B, T, C).transpose(1, 0, 2).reshape(T * B, C)

    out = pl.pallas_call(
        fused_eeg_kernel,
        out_shape=jax.ShapeDtypeStruct((B, D + NCLS_PAD), DTYPE),
        # no grid: single invocation, every operand resident in VMEM
    )(x2d, params["pf"], params["bw"], params["k1"])

    return out[:, D:D + NCLS] if classification else out[:, :D]


# ----------------------------- parameters -------------------------------------
def sinusoidal_pe(t, c):
    pos = jnp.arange(t, dtype=DTYPE)[:, None]
    i = jnp.arange(0, c, 2, dtype=DTYPE)[None, :]
    angle = pos / jnp.power(10000.0, i / c)
    pe = jnp.zeros((t, c), DTYPE)
    pe = pe.at[:, 0::2].set(jnp.sin(angle))
    pe = pe.at[:, 1::2].set(jnp.cos(angle))
    return pe


def init_params(key):
    """Generate torch-layout weights, then fold / pre-split / pack them
    host-side into the exact blobs the fused kernel consumes (zero runtime
    cost)."""
    ks = jax.random.split(key, 16)
    n = lambda k, shape, s=0.05: (s * jax.random.normal(k, shape)).astype(DTYPE)

    # ---- torch-layout parameters ---------------------------------------------
    in_proj_w = n(ks[0], (3 * C, C))          # MultiheadAttention.in_proj_weight
    in_proj_b = n(ks[1], (3 * C,))
    out_proj_w = n(ks[2], (C, C))
    out_proj_b = n(ks[3], (C,))
    conv1_w = n(ks[4], (T, 1, C, 1))          # Conv2d(1, T, (14, 1))
    conv1_b = n(ks[5], (T,))
    conv2_w = n(ks[6], (D, T, 1, T))          # Conv2d(T, D, (1, T))
    conv2_b = n(ks[7], (D,))
    lin1_w = n(ks[8], (F, D)); lin1_b = n(ks[9], (F,))
    lin2_w = n(ks[10], (D, F)); lin2_b = n(ks[11], (D,))
    cls_w = n(ks[12], (NCLS, D)); cls_b = n(ks[13], (NCLS,))

    # BatchNorm eval-mode with fresh running stats: scale = 1/sqrt(1+eps), bias = 0
    bn_s = (1.0 + BN_EPS) ** -0.5
    bn1_scale = jnp.full((T,), bn_s, DTYPE)
    bn2_scale = jnp.full((D,), bn_s, DTYPE)

    # ---- attention: fused QKV, per-head 7->8 zero padding, scale folded -------
    scale = 1.0 / (DH ** 0.5)
    wq_t = in_proj_w[0:C].T * scale
    wk_t = in_proj_w[C:2 * C].T
    wv_t = in_proj_w[2 * C:3 * C].T
    bq = in_proj_b[0:C] * scale
    bk = in_proj_b[C:2 * C]
    bv = in_proj_b[2 * C:3 * C]

    def pad_cols(w):   # (C, C) -> (C, NHEAD*DP), per-head zero-pad 7 -> 8
        return jnp.concatenate(
            [jnp.pad(w[:, h * DH:(h + 1) * DH], ((0, 0), (0, DP - DH)))
             for h in range(NHEAD)], axis=1)

    def pad_vec(v):    # (C,) -> (NHEAD*DP,)
        return jnp.concatenate(
            [jnp.pad(v[h * DH:(h + 1) * DH], (0, DP - DH)) for h in range(NHEAD)])

    w_qkv = jnp.concatenate([pad_cols(wq_t), pad_cols(wk_t), pad_cols(wv_t)],
                            axis=1)                                 # (14, 48)
    b_qkv = jnp.concatenate([pad_vec(bq), pad_vec(bk), pad_vec(bv)])  # (48,)

    wo_t = out_proj_w.T                                             # (14, 14)
    wo_pad = jnp.zeros((QKVW, C), DTYPE)                            # zero padded rows
    for h in range(NHEAD):
        wo_pad = wo_pad.at[h * DP:h * DP + DH, :].set(wo_t[h * DH:(h + 1) * DH, :])

    # ---- conv1: fold BN1 and pre-permute for the `.view` reinterpretation -----
    w1_eff = conv1_w[:, 0, :, 0] * bn1_scale[:, None]               # (T, C)
    b1_eff = conv1_b * bn1_scale
    # Kflat[p, o*T + (p % T)] = w1_eff[o, p // T],  p = flat index of y1 (T, C)
    p_idx = jnp.arange(T * C)
    o_idx = jnp.arange(T)
    P, O = jnp.meshgrid(p_idx, o_idx, indexing="ij")                # (224, 16)
    cols = O * T + (P % T)
    vals = w1_eff[O, P // T]
    k1 = (jnp.zeros((T * C, T * T), DTYPE).at[P, cols].set(vals)
          .reshape(T, C, T * T).astype(jnp.bfloat16))               # 112 KiB bf16
    b1rep = jnp.repeat(b1_eff, T)                                   # (256,)

    # ---- conv2: flatten to (T*T, D) matmul, fold BN2 ---------------------------
    w2 = conv2_w.reshape(D, T * T).T * bn2_scale[None, :]           # (256, 32)
    b2 = conv2_b * bn2_scale

    # ---- f32 blob (PE + all biases / LayerNorm vectors) ------------------------
    pe_i = jnp.repeat(sinusoidal_pe(T, C), B, axis=0)               # (32, 14)
    pf = jnp.zeros((PF_ROWS, LF), DTYPE)
    pf = pf.at[PE_OFF:PE_OFF + ROWS, :C].set(pe_i)
    pf = pf.at[BQKV_OFF, :3 * QKVW].set(b_qkv)
    pf = pf.at[BO_OFF, :C].set(out_proj_b)
    pf = pf.at[G1_OFF, :C].set(jnp.ones((C,), DTYPE))               # LN1 gamma
    pf = pf.at[B1REP_OFF, :T * T].set(b1rep)
    pf = pf.at[B2_OFF, :D].set(b2)
    pf = pf.at[BF1_OFF, :F].set(lin1_b)
    pf = pf.at[BF2_OFF, :D].set(lin2_b)
    pf = pf.at[G2_OFF, :D].set(jnp.ones((D,), DTYPE))               # LN2 gamma
    pf = pf.at[BC_OFF, :NCLS].set(cls_b)
    # rows B1_OFF / B2L_OFF stay zero (LayerNorm betas at init)

    # ---- bf16 blob (all dense matmul weights) -----------------------------------
    bw = jnp.zeros((BW_ROWS, LW), DTYPE)
    bw = bw.at[WQKV_OFF:WQKV_OFF + C, :3 * QKVW].set(w_qkv)
    bw = bw.at[WO_OFF:WO_OFF + QKVW, :C].set(wo_pad)
    bw = bw.at[W2_OFF:W2_OFF + T * T, :D].set(w2)
    bw = bw.at[WF1_OFF:WF1_OFF + D, :F].set(lin1_w.T)
    bw = bw.at[WF2_OFF:WF2_OFF + F, :D].set(lin2_w.T)
    bw = bw.at[WC_OFF:WC_OFF + D, :NCLS].set(cls_w.T)
    bw = bw.astype(jnp.bfloat16)

    return dict(pf=pf, bw=bw, k1=k1)


# ----------------------------- main --------------------------------------------
if __name__ == "__main__":
    key = jax.random.PRNGKey(0)
    k_x, k_p = jax.random.split(key)
    # torch input layout: (B, eeg_channels, timesteps)
    x = jax.random.normal(k_x, (B, C, T), DTYPE)
    params = init_params(k_p)

    fwd = jax.jit(functools.partial(eeg_encoder_forward, classification=False))
    cls = jax.jit(functools.partial(eeg_encoder_forward, classification=True))

    enc = jax.block_until_ready(fwd(x, params))
    logits = jax.block_until_ready(cls(x, params))

    assert enc.shape == (B, D) and logits.shape == (B, NCLS)
    assert bool(jnp.all(jnp.isfinite(enc))) and bool(jnp.all(jnp.isfinite(logits)))
    print("KERNEL_OK")
</pallas_src>

<mosaic_0001>
module attributes {stable_mosaic.version = 11 : i64} {
  func.func @fused_eeg_kernel(%arg0: memref<32x14xf32, #tpu.memory_space<vmem>>, %arg1: memref<48x256xf32, #tpu.memory_space<vmem>>, %arg2: memref<416x64xbf16, #tpu.memory_space<vmem>>, %arg3: memref<16x14x256xbf16, #tpu.memory_space<vmem>>, %arg4: memref<2x48xf32, #tpu.memory_space<vmem>>) attributes {dimension_semantics = [], scalar_prefetch = 0 : i64, scratch_operands = 0 : i64, tpu.core_type = #tpu.core_type<tc>} {
    %c0 = arith.constant 0 : index
    %c0_0 = arith.constant 0 : index
    %0 = vector.load %arg0[%c0, %c0_0] : memref<32x14xf32, #tpu.memory_space<vmem>>, vector<32x14xf32>
    %c0_1 = arith.constant 0 : index
    %c0_2 = arith.constant 0 : index
    %1 = vector.load %arg1[%c0_1, %c0_2] : memref<48x256xf32, #tpu.memory_space<vmem>>, vector<32x14xf32>
    %2 = arith.addf %0, %1 : vector<32x14xf32>
    %3 = arith.truncf %2 : vector<32x14xf32> to vector<32x14xbf16>
    %c0_3 = arith.constant 0 : index
    %c0_4 = arith.constant 0 : index
    %4 = vector.load %arg2[%c0_3, %c0_4] : memref<416x64xbf16, #tpu.memory_space<vmem>>, vector<14x48xbf16>
    %cst = arith.constant dense<0.000000e+00> : vector<32x48xf32>
    %5 = tpu.matmul %3, %4, %cst {dimension_numbers = #tpu.dot_dimension_numbers<[1], [0], [0], [1], [0, 0, 1, 1], [], []>} : vector<32x14xbf16>, vector<14x48xbf16>, vector<32x48xf32> -> vector<32x48xf32>
    %c32 = arith.constant 32 : index
    %c0_5 = arith.constant 0 : index
    %6 = vector.load %arg1[%c32, %c0_5] : memref<48x256xf32, #tpu.memory_space<vmem>>, vector<1x48xf32>
    %7 = vector.broadcast %6 : vector<1x48xf32> to vector<32x48xf32>
    %8 = arith.addf %5, %7 : vector<32x48xf32>
    %9 = tpu.iota {dimensions = array<i32: 0>} : vector<32x32xi32>
    %10 = tpu.iota {dimensions = array<i32: 1>} : vector<32x32xi32>
    %c2_i32 = arith.constant 2 : i32
    %c0_i32 = arith.constant 0 : i32
    %11 = arith.cmpi eq, %c2_i32, %c0_i32 : i32
    %c1_i32 = arith.constant 1 : i32
    %12 = arith.select %11, %c1_i32, %c2_i32 : i32
    %13 = vector.broadcast %12 : i32 to vector<32x32xi32>
    %14 = arith.remsi %9, %13 : vector<32x32xi32>
    %c0_i32_6 = arith.constant 0 : i32
    %15 = vector.broadcast %c0_i32_6 : i32 to vector<32x32xi32>
    %16 = arith.cmpi ne, %14, %15 : vector<32x32xi32>
    %c0_i32_7 = arith.constant 0 : i32
    %17 = vector.broadcast %c0_i32_7 : i32 to vector<32x32xi32>
    %18 = arith.cmpi slt, %14, %17 : vector<32x32xi32>
    %c0_i32_8 = arith.constant 0 : i32
    %19 = arith.cmpi slt, %12, %c0_i32_8 : i32
    %20 = vector.broadcast %19 : i1 to vector<32x32xi1>
    %21 = vector.broadcast %20 : vector<32x32xi1> to vector<32x32xi1>
    %22 = arith.xori %18, %21 : vector<32x32xi1>
    %23 = arith.andi %22, %16 : vector<32x32xi1>
    %24 = vector.broadcast %12 : i32 to vector<32x32xi32>
    %25 = arith.addi %14, %24 : vector<32x32xi32>
    %26 = arith.select %23, %25, %14 : vector<32x32xi1>, vector<32x32xi32>
    %c2_i32_9 = arith.constant 2 : i32
    %c0_i32_10 = arith.constant 0 : i32
    %27 = arith.cmpi eq, %c2_i32_9, %c0_i32_10 : i32
    %c1_i32_11 = arith.constant 1 : i32
    %28 = arith.select %27, %c1_i32_11, %c2_i32_9 : i32
    %29 = vector.broadcast %28 : i32 to vector<32x32xi32>
    %30 = arith.remsi %10, %29 : vector<32x32xi32>
    %c0_i32_12 = arith.constant 0 : i32
    %31 = vector.broadcast %c0_i32_12 : i32 to vector<32x32xi32>
    %32 = arith.cmpi ne, %30, %31 : vector<32x32xi32>
    %c0_i32_13 = arith.constant 0 : i32
    %33 = vector.broadcast %c0_i32_13 : i32 to vector<32x32xi32>
    %34 = arith.cmpi slt, %30, %33 : vector<32x32xi32>
    %c0_i32_14 = arith.constant 0 : i32
    %35 = arith.cmpi slt, %28, %c0_i32_14 : i32
    %36 = vector.broadcast %35 : i1 to vector<32x32xi1>
    %37 = vector.broadcast %36 : vector<32x32xi1> to vector<32x32xi1>
    %38 = arith.xori %34, %37 : vector<32x32xi1>
    %39 = arith.andi %38, %32 : vector<32x32xi1>
    %40 = vector.broadcast %28 : i32 to vector<32x32xi32>
    %41 = arith.addi %30, %40 : vector<32x32xi32>
    %42 = arith.select %39, %41, %30 : vector<32x32xi1>, vector<32x32xi32>
    %43 = arith.cmpi eq, %26, %42 : vector<32x32xi32>
    %cst_15 = arith.constant 0.000000e+00 : f32
    %cst_16 = arith.constant -1.000000e+30 : f32
    %44 = vector.broadcast %cst_15 : f32 to vector<32x32xf32>
    %45 = vector.broadcast %cst_16 : f32 to vector<32x32xf32>
    %46 = arith.select %43, %44, %45 : vector<32x32xi1>, vector<32x32xf32>
    %47 = vector.extract_strided_slice %8 {offsets = [0, 0], sizes = [32, 8], strides = [1, 1]} : vector<32x48xf32> to vector<32x8xf32>
    %48 = arith.truncf %47 : vector<32x8xf32> to vector<32x8xbf16>
    %49 = vector.extract_strided_slice %8 {offsets = [0, 16], sizes = [32, 8], strides = [1, 1]} : vector<32x48xf32> to vector<32x8xf32>
    %50 = arith.truncf %49 : vector<32x8xf32> to vector<32x8xbf16>
    %51 = vector.extract_strided_slice %8 {offsets = [0, 32], sizes = [32, 8], strides = [1, 1]} : vector<32x48xf32> to vector<32x8xf32>
    %52 = arith.truncf %51 : vector<32x8xf32> to vector<32x8xbf16>
    %cst_17 = arith.constant dense<0.000000e+00> : vector<32x32xf32>
    %53 = tpu.matmul %48, %50, %cst_17 {dimension_numbers = #tpu.dot_dimension_numbers<[1], [1], [0], [0], [0, 0, 1, 0], [], []>} : vector<32x8xbf16>, vector<32x8xbf16>, vector<32x32xf32> -> vector<32x32xf32>
    %54 = arith.addf %53, %46 : vector<32x32xf32>
    %cst_18 = arith.constant dense<0xFF800000> : vector<32xf32>
    %55 = vector.multi_reduction <maximumf>, %54, %cst_18 [1] : vector<32x32xf32> to vector<32xf32>
    %56 = vector.shape_cast %55 : vector<32xf32> to vector<32x1xf32>
    %57 = vector.broadcast %56 : vector<32x1xf32> to vector<32x32xf32>
    %58 = arith.subf %54, %57 : vector<32x32xf32>
    %59 = math.exp %58 : vector<32x32xf32>
    %cst_19 = arith.constant dense<0.000000e+00> : vector<32xf32>
    %60 = vector.multi_reduction <add>, %59, %cst_19 [1] : vector<32x32xf32> to vector<32xf32>
    %61 = vector.shape_cast %60 : vector<32xf32> to vector<32x1xf32>
    %62 = tpu.reciprocal %61 {approx = true} : vector<32x1xf32> -> vector<32x1xf32>
    %63 = vector.broadcast %62 : vector<32x1xf32> to vector<32x32xf32>
    %64 = arith.mulf %59, %63 : vector<32x32xf32>
    %65 = arith.truncf %64 : vector<32x32xf32> to vector<32x32xbf16>
    %cst_20 = arith.constant dense<0.000000e+00> : vector<32x8xf32>
    %66 = tpu.matmul %65, %52, %cst_20 {dimension_numbers = #tpu.dot_dimension_numbers<[1], [0], [0], [1], [0, 0, 1, 1], [], []>} : vector<32x32xbf16>, vector<32x8xbf16>, vector<32x8xf32> -> vector<32x8xf32>
    %67 = vector.extract_strided_slice %8 {offsets = [0, 8], sizes = [32, 8], strides = [1, 1]} : vector<32x48xf32> to vector<32x8xf32>
    %68 = arith.truncf %67 : vector<32x8xf32> to vector<32x8xbf16>
    %69 = vector.extract_strided_slice %8 {offsets = [0, 24], sizes = [32, 8], strides = [1, 1]} : vector<32x48xf32> to vector<32x8xf32>
    %70 = arith.truncf %69 : vector<32x8xf32> to vector<32x8xbf16>
    %71 = vector.extract_strided_slice %8 {offsets = [0, 40], sizes = [32, 8], strides = [1, 1]} : vector<32x48xf32> to vector<32x8xf32>
    %72 = arith.truncf %71 : vector<32x8xf32> to vector<32x8xbf16>
    %cst_21 = arith.constant dense<0.000000e+00> : vector<32x32xf32>
    %73 = tpu.matmul %68, %70, %cst_21 {dimension_numbers = #tpu.dot_dimension_numbers<[1], [1], [0], [0], [0, 0, 1, 0], [], []>} : vector<32x8xbf16>, vector<32x8xbf16>, vector<32x32xf32> -> vector<32x32xf32>
    %74 = arith.addf %73, %46 : vector<32x32xf32>
    %cst_22 = arith.constant dense<0xFF800000> : vector<32xf32>
    %75 = vector.multi_reduction <maximumf>, %74, %cst_22 [1] : vector<32x32xf32> to vector<32xf32>
    %76 = vector.shape_cast %75 : vector<32xf32> to vector<32x1xf32>
    %77 = vector.broadcast %76 : vector<32x1xf32> to vector<32x32xf32>
    %78 = arith.subf %74, %77 : vector<32x32xf32>
    %79 = math.exp %78 : vector<32x32xf32>
    %cst_23 = arith.constant dense<0.000000e+00> : vector<32xf32>
    %80 = vector.multi_reduction <add>, %79, %cst_23 [1] : vector<32x32xf32> to vector<32xf32>
    %81 = vector.shape_cast %80 : vector<32xf32> to vector<32x1xf32>
    %82 = tpu.reciprocal %81 {approx = true} : vector<32x1xf32> -> vector<32x1xf32>
    %83 = vector.broadcast %82 : vector<32x1xf32> to vector<32x32xf32>
    %84 = arith.mulf %79, %83 : vector<32x32xf32>
    %85 = arith.truncf %84 : vector<32x32xf32> to vector<32x32xbf16>
    %cst_24 = arith.constant dense<0.000000e+00> : vector<32x8xf32>
    %86 = tpu.matmul %85, %72, %cst_24 {dimension_numbers = #tpu.dot_dimension_numbers<[1], [0], [0], [1], [0, 0, 1, 1], [], []>} : vector<32x32xbf16>, vector<32x8xbf16>, vector<32x8xf32> -> vector<32x8xf32>
    %87 = tpu.concatenate %66, %86 in 1 : vector<32x8xf32>, vector<32x8xf32> -> vector<32x16xf32>
    %88 = arith.truncf %87 : vector<32x16xf32> to vector<32x16xbf16>
    %c16 = arith.constant 16 : index
    %c0_25 = arith.constant 0 : index
    %89 = vector.load %arg2[%c16, %c0_25] : memref<416x64xbf16, #tpu.memory_space<vmem>>, vector<16x14xbf16>
    %cst_26 = arith.constant dense<0.000000e+00> : vector<32x14xf32>
    %90 = tpu.matmul %88, %89, %cst_26 {dimension_numbers = #tpu.dot_dimension_numbers<[1], [0], [0], [1], [0, 0, 1, 1], [], []>} : vector<32x16xbf16>, vector<16x14xbf16>, vector<32x14xf32> -> vector<32x14xf32>
    %c33 = arith.constant 33 : index
    %c0_27 = arith.constant 0 : index
    %91 = vector.load %arg1[%c33, %c0_27] : memref<48x256xf32, #tpu.memory_space<vmem>>, vector<1x14xf32>
    %92 = vector.broadcast %91 : vector<1x14xf32> to vector<32x14xf32>
    %93 = arith.addf %90, %92 : vector<32x14xf32>
    %94 = arith.addf %2, %93 : vector<32x14xf32>
    %cst_28 = arith.constant dense<0.000000e+00> : vector<32xf32>
    %95 = vector.multi_reduction <add>, %94, %cst_28 [1] : vector<32x14xf32> to vector<32xf32>
    %96 = vector.shape_cast %95 : vector<32xf32> to vector<32x1xf32>
    %cst_29 = arith.constant 1.400000e+01 : f32
    %97 = vector.broadcast %cst_29 : f32 to vector<32x1xf32>
    %98 = arith.divf %96, %97 : vector<32x1xf32>
    %99 = vector.broadcast %98 : vector<32x1xf32> to vector<32x14xf32>
    %100 = arith.subf %94, %99 : vector<32x14xf32>
    %101 = arith.mulf %100, %100 : vector<32x14xf32>
    %cst_30 = arith.constant dense<0.000000e+00> : vector<32xf32>
    %102 = vector.multi_reduction <add>, %101, %cst_30 [1] : vector<32x14xf32> to vector<32xf32>
    %103 = vector.shape_cast %102 : vector<32xf32> to vector<32x1xf32>
    %cst_31 = arith.constant 1.400000e+01 : f32
    %104 = vector.broadcast %cst_31 : f32 to vector<32x1xf32>
    %105 = arith.divf %103, %104 : vector<32x1xf32>
    %cst_32 = arith.constant 9.99999974E-6 : f32
    %106 = vector.broadcast %cst_32 : f32 to vector<32x1xf32>
    %107 = arith.addf %105, %106 : vector<32x1xf32>
    %108 = math.rsqrt %107 : vector<32x1xf32>
    %109 = vector.broadcast %108 : vector<32x1xf32> to vector<32x14xf32>
    %110 = arith.mulf %100, %109 : vector<32x14xf32>
    %c34 = arith.constant 34 : index
    %c0_33 = arith.constant 0 : index
    %111 = vector.load %arg1[%c34, %c0_33] : memref<48x256xf32, #tpu.memory_space<vmem>>, vector<1x14xf32>
    %112 = vector.broadcast %111 : vector<1x14xf32> to vector<32x14xf32>
    %113 = arith.mulf %110, %112 : vector<32x14xf32>
    %c35 = arith.constant 35 : index
    %c0_34 = arith.constant 0 : index
    %114 = vector.load %arg1[%c35, %c0_34] : memref<48x256xf32, #tpu.memory_space<vmem>>, vector<1x14xf32>
    %115 = vector.broadcast %114 : vector<1x14xf32> to vector<32x14xf32>
    %116 = arith.addf %113, %115 : vector<32x14xf32>
    %117 = arith.truncf %116 : vector<32x14xf32> to vector<32x14xbf16>
    %cst_35 = arith.constant 0.000000e+00 : f32
    %118 = vector.broadcast %cst_35 : f32 to vector<2x256xf32>
    %119 = vector.extract_strided_slice %117 {offsets = [0, 0], sizes = [2, 14], strides = [1, 1]} : vector<32x14xbf16> to vector<2x14xbf16>
    %c0_36 = arith.constant 0 : index
    %c0_37 = arith.constant 0 : index
    %c0_38 = arith.constant 0 : index
    %120 = vector.load %arg3[%c0_36, %c0_37, %c0_38] : memref<16x14x256xbf16, #tpu.memory_space<vmem>>, vector<1x14x256xbf16>
    %121 = vector.shape_cast %120 : vector<1x14x256xbf16> to vector<14x256xbf16>
    %cst_39 = arith.constant dense<0.000000e+00> : vector<2x256xf32>
    %122 = tpu.matmul %119, %121, %cst_39 {dimension_numbers = #tpu.dot_dimension_numbers<[1], [0], [0], [1], [0, 0, 1, 1], [], []>} : vector<2x14xbf16>, vector<14x256xbf16>, vector<2x256xf32> -> vector<2x256xf32>
    %123 = arith.addf %118, %122 : vector<2x256xf32>
    %124 = vector.extract_strided_slice %117 {offsets = [2, 0], sizes = [2, 14], strides = [1, 1]} : vector<32x14xbf16> to vector<2x14xbf16>
    %c1 = arith.constant 1 : index
    %c0_40 = arith.constant 0 : index
    %c0_41 = arith.constant 0 : index
    %125 = vector.load %arg3[%c1, %c0_40, %c0_41] : memref<16x14x256xbf16, #tpu.memory_space<vmem>>, vector<1x14x256xbf16>
    %126 = vector.shape_cast %125 : vector<1x14x256xbf16> to vector<14x256xbf16>
    %cst_42 = arith.constant dense<0.000000e+00> : vector<2x256xf32>
    %127 = tpu.matmul %124, %126, %cst_42 {dimension_numbers = #tpu.dot_dimension_numbers<[1], [0], [0], [1], [0, 0, 1, 1], [], []>} : vector<2x14xbf16>, vector<14x256xbf16>, vector<2x256xf32> -> vector<2x256xf32>
    %128 = arith.addf %123, %127 : vector<2x256xf32>
    %129 = vector.extract_strided_slice %117 {offsets = [4, 0], sizes = [2, 14], strides = [1, 1]} : vector<32x14xbf16> to vector<2x14xbf16>
    %c2 = arith.constant 2 : index
    %c0_43 = arith.constant 0 : index
    %c0_44 = arith.constant 0 : index
    %130 = vector.load %arg3[%c2, %c0_43, %c0_44] : memref<16x14x256xbf16, #tpu.memory_space<vmem>>, vector<1x14x256xbf16>
    %131 = vector.shape_cast %130 : vector<1x14x256xbf16> to vector<14x256xbf16>
    %cst_45 = arith.constant dense<0.000000e+00> : vector<2x256xf32>
    %132 = tpu.matmul %129, %131, %cst_45 {dimension_numbers = #tpu.dot_dimension_numbers<[1], [0], [0], [1], [0, 0, 1, 1], [], []>} : vector<2x14xbf16>, vector<14x256xbf16>, vector<2x256xf32> -> vector<2x256xf32>
    %133 = arith.addf %128, %132 : vector<2x256xf32>
    %134 = vector.extract_strided_slice %117 {offsets = [6, 0], sizes = [2, 14], strides = [1, 1]} : vector<32x14xbf16> to vector<2x14xbf16>
    %c3 = arith.constant 3 : index
    %c0_46 = arith.constant 0 : index
    %c0_47 = arith.constant 0 : index
    %135 = vector.load %arg3[%c3, %c0_46, %c0_47] : memref<16x14x256xbf16, #tpu.memory_space<vmem>>, vector<1x14x256xbf16>
    %136 = vector.shape_cast %135 : vector<1x14x256xbf16> to vector<14x256xbf16>
    %cst_48 = arith.constant dense<0.000000e+00> : vector<2x256xf32>
    %137 = tpu.matmul %134, %136, %cst_48 {dimension_numbers = #tpu.dot_dimension_numbers<[1], [0], [0], [1], [0, 0, 1, 1], [], []>} : vector<2x14xbf16>, vector<14x256xbf16>, vector<2x256xf32> -> vector<2x256xf32>
    %138 = arith.addf %133, %137 : vector<2x256xf32>
    %139 = vector.extract_strided_slice %117 {offsets = [8, 0], sizes = [2, 14], strides = [1, 1]} : vector<32x14xbf16> to vector<2x14xbf16>
    %c4 = arith.constant 4 : index
    %c0_49 = arith.constant 0 : index
    %c0_50 = arith.constant 0 : index
    %140 = vector.load %arg3[%c4, %c0_49, %c0_50] : memref<16x14x256xbf16, #tpu.memory_space<vmem>>, vector<1x14x256xbf16>
    %141 = vector.shape_cast %140 : vector<1x14x256xbf16> to vector<14x256xbf16>
    %cst_51 = arith.constant dense<0.000000e+00> : vector<2x256xf32>
    %142 = tpu.matmul %139, %141, %cst_51 {dimension_numbers = #tpu.dot_dimension_numbers<[1], [0], [0], [1], [0, 0, 1, 1], [], []>} : vector<2x14xbf16>, vector<14x256xbf16>, vector<2x256xf32> -> vector<2x256xf32>
    %143 = arith.addf %138, %142 : vector<2x256xf32>
    %144 = vector.extract_strided_slice %117 {offsets = [10, 0], sizes = [2, 14], strides = [1, 1]} : vector<32x14xbf16> to vector<2x14xbf16>
    %c5 = arith.constant 5 : index
    %c0_52 = arith.constant 0 : index
    %c0_53 = arith.constant 0 : index
    %145 = vector.load %arg3[%c5, %c0_52, %c0_53] : memref<16x14x256xbf16, #tpu.memory_space<vmem>>, vector<1x14x256xbf16>
    %146 = vector.shape_cast %145 : vector<1x14x256xbf16> to vector<14x256xbf16>
    %cst_54 = arith.constant dense<0.000000e+00> : vector<2x256xf32>
    %147 = tpu.matmul %144, %146, %cst_54 {dimension_numbers = #tpu.dot_dimension_numbers<[1], [0], [0], [1], [0, 0, 1, 1], [], []>} : vector<2x14xbf16>, vector<14x256xbf16>, vector<2x256xf32> -> vector<2x256xf32>
    %148 = arith.addf %143, %147 : vector<2x256xf32>
    %149 = vector.extract_strided_slice %117 {offsets = [12, 0], sizes = [2, 14], strides = [1, 1]} : vector<32x14xbf16> to vector<2x14xbf16>
    %c6 = arith.constant 6 : index
    %c0_55 = arith.constant 0 : index
    %c0_56 = arith.constant 0 : index
    %150 = vector.load %arg3[%c6, %c0_55, %c0_56] : memref<16x14x256xbf16, #tpu.memory_space<vmem>>, vector<1x14x256xbf16>
    %151 = vector.shape_cast %150 : vector<1x14x256xbf16> to vector<14x256xbf16>
    %cst_57 = arith.constant dense<0.000000e+00> : vector<2x256xf32>
    %152 = tpu.matmul %149, %151, %cst_57 {dimension_numbers = #tpu.dot_dimension_numbers<[1], [0], [0], [1], [0, 0, 1, 1], [], []>} : vector<2x14xbf16>, vector<14x256xbf16>, vector<2x256xf32> -> vector<2x256xf32>
    %153 = arith.addf %148, %152 : vector<2x256xf32>
    %154 = vector.extract_strided_slice %117 {offsets = [14, 0], sizes = [2, 14], strides = [1, 1]} : vector<32x14xbf16> to vector<2x14xbf16>
    %c7 = arith.constant 7 : index
    %c0_58 = arith.constant 0 : index
    %c0_59 = arith.constant 0 : index
    %155 = vector.load %arg3[%c7, %c0_58, %c0_59] : memref<16x14x256xbf16, #tpu.memory_space<vmem>>, vector<1x14x256xbf16>
    %156 = vector.shape_cast %155 : vector<1x14x256xbf16> to vector<14x256xbf16>
    %cst_60 = arith.constant dense<0.000000e+00> : vector<2x256xf32>
    %157 = tpu.matmul %154, %156, %cst_60 {dimension_numbers = #tpu.dot_dimension_numbers<[1], [0], [0], [1], [0, 0, 1, 1], [], []>} : vector<2x14xbf16>, vector<14x256xbf16>, vector<2x256xf32> -> vector<2x256xf32>
    %158 = arith.addf %153, %157 : vector<2x256xf32>
    %159 = vector.extract_strided_slice %117 {offsets = [16, 0], sizes = [2, 14], strides = [1, 1]} : vector<32x14xbf16> to vector<2x14xbf16>
    %c8 = arith.constant 8 : index
    %c0_61 = arith.constant 0 : index
    %c0_62 = arith.constant 0 : index
    %160 = vector.load %arg3[%c8, %c0_61, %c0_62] : memref<16x14x256xbf16, #tpu.memory_space<vmem>>, vector<1x14x256xbf16>
    %161 = vector.shape_cast %160 : vector<1x14x256xbf16> to vector<14x256xbf16>
    %cst_63 = arith.constant dense<0.000000e+00> : vector<2x256xf32>
    %162 = tpu.matmul %159, %161, %cst_63 {dimension_numbers = #tpu.dot_dimension_numbers<[1], [0], [0], [1], [0, 0, 1, 1], [], []>} : vector<2x14xbf16>, vector<14x256xbf16>, vector<2x256xf32> -> vector<2x256xf32>
    %163 = arith.addf %158, %162 : vector<2x256xf32>
    %164 = vector.extract_strided_slice %117 {offsets = [18, 0], sizes = [2, 14], strides = [1, 1]} : vector<32x14xbf16> to vector<2x14xbf16>
    %c9 = arith.constant 9 : index
    %c0_64 = arith.constant 0 : index
    %c0_65 = arith.constant 0 : index
    %165 = vector.load %arg3[%c9, %c0_64, %c0_65] : memref<16x14x256xbf16, #tpu.memory_space<vmem>>, vector<1x14x256xbf16>
    %166 = vector.shape_cast %165 : vector<1x14x256xbf16> to vector<14x256xbf16>
    %cst_66 = arith.constant dense<0.000000e+00> : vector<2x256xf32>
    %167 = tpu.matmul %164, %166, %cst_66 {dimension_numbers = #tpu.dot_dimension_numbers<[1], [0], [0], [1], [0, 0, 1, 1], [], []>} : vector<2x14xbf16>, vector<14x256xbf16>, vector<2x256xf32> -> vector<2x256xf32>
    %168 = arith.addf %163, %167 : vector<2x256xf32>
    %169 = vector.extract_strided_slice %117 {offsets = [20, 0], sizes = [2, 14], strides = [1, 1]} : vector<32x14xbf16> to vector<2x14xbf16>
    %c10 = arith.constant 10 : index
    %c0_67 = arith.constant 0 : index
    %c0_68 = arith.constant 0 : index
    %170 = vector.load %arg3[%c10, %c0_67, %c0_68] : memref<16x14x256xbf16, #tpu.memory_space<vmem>>, vector<1x14x256xbf16>
    %171 = vector.shape_cast %170 : vector<1x14x256xbf16> to vector<14x256xbf16>
    %cst_69 = arith.constant dense<0.000000e+00> : vector<2x256xf32>
    %172 = tpu.matmul %169, %171, %cst_69 {dimension_numbers = #tpu.dot_dimension_numbers<[1], [0], [0], [1], [0, 0, 1, 1], [], []>} : vector<2x14xbf16>, vector<14x256xbf16>, vector<2x256xf32> -> vector<2x256xf32>
    %173 = arith.addf %168, %172 : vector<2x256xf32>
    %174 = vector.extract_strided_slice %117 {offsets = [22, 0], sizes = [2, 14], strides = [1, 1]} : vector<32x14xbf16> to vector<2x14xbf16>
    %c11 = arith.constant 11 : index
    %c0_70 = arith.constant 0 : index
    %c0_71 = arith.constant 0 : index
    %175 = vector.load %arg3[%c11, %c0_70, %c0_71] : memref<16x14x256xbf16, #tpu.memory_space<vmem>>, vector<1x14x256xbf16>
    %176 = vector.shape_cast %175 : vector<1x14x256xbf16> to vector<14x256xbf16>
    %cst_72 = arith.constant dense<0.000000e+00> : vector<2x256xf32>
    %177 = tpu.matmul %174, %176, %cst_72 {dimension_numbers = #tpu.dot_dimension_numbers<[1], [0], [0], [1], [0, 0, 1, 1], [], []>} : vector<2x14xbf16>, vector<14x256xbf16>, vector<2x256xf32> -> vector<2x256xf32>
    %178 = arith.addf %173, %177 : vector<2x256xf32>
    %179 = vector.extract_strided_slice %117 {offsets = [24, 0], sizes = [2, 14], strides = [1, 1]} : vector<32x14xbf16> to vector<2x14xbf16>
    %c12 = arith.constant 12 : index
    %c0_73 = arith.constant 0 : index
    %c0_74 = arith.constant 0 : index
    %180 = vector.load %arg3[%c12, %c0_73, %c0_74] : memref<16x14x256xbf16, #tpu.memory_space<vmem>>, vector<1x14x256xbf16>
    %181 = vector.shape_cast %180 : vector<1x14x256xbf16> to vector<14x256xbf16>
    %cst_75 = arith.constant dense<0.000000e+00> : vector<2x256xf32>
    %182 = tpu.matmul %179, %181, %cst_75 {dimension_numbers = #tpu.dot_dimension_numbers<[1], [0], [0], [1], [0, 0, 1, 1], [], []>} : vector<2x14xbf16>, vector<14x256xbf16>, vector<2x256xf32> -> vector<2x256xf32>
    %183 = arith.addf %178, %182 : vector<2x256xf32>
    %184 = vector.extract_strided_slice %117 {offsets = [26, 0], sizes = [2, 14], strides = [1, 1]} : vector<32x14xbf16> to vector<2x14xbf16>
    %c13 = arith.constant 13 : index
    %c0_76 = arith.constant 0 : index
    %c0_77 = arith.constant 0 : index
    %185 = vector.load %arg3[%c13, %c0_76, %c0_77] : memref<16x14x256xbf16, #tpu.memory_space<vmem>>, vector<1x14x256xbf16>
    %186 = vector.shape_cast %185 : vector<1x14x256xbf16> to vector<14x256xbf16>
    %cst_78 = arith.constant dense<0.000000e+00> : vector<2x256xf32>
    %187 = tpu.matmul %184, %186, %cst_78 {dimension_numbers = #tpu.dot_dimension_numbers<[1], [0], [0], [1], [0, 0, 1, 1], [], []>} : vector<2x14xbf16>, vector<14x256xbf16>, vector<2x256xf32> -> vector<2x256xf32>
    %188 = arith.addf %183, %187 : vector<2x256xf32>
    %189 = vector.extract_strided_slice %117 {offsets = [28, 0], sizes = [2, 14], strides = [1, 1]} : vector<32x14xbf16> to vector<2x14xbf16>
    %c14 = arith.constant 14 : index
    %c0_79 = arith.constant 0 : index
    %c0_80 = arith.constant 0 : index
    %190 = vector.load %arg3[%c14, %c0_79, %c0_80] : memref<16x14x256xbf16, #tpu.memory_space<vmem>>, vector<1x14x256xbf16>
    %191 = vector.shape_cast %190 : vector<1x14x256xbf16> to vector<14x256xbf16>
    %cst_81 = arith.constant dense<0.000000e+00> : vector<2x256xf32>
    %192 = tpu.matmul %189, %191, %cst_81 {dimension_numbers = #tpu.dot_dimension_numbers<[1], [0], [0], [1], [0, 0, 1, 1], [], []>} : vector<2x14xbf16>, vector<14x256xbf16>, vector<2x256xf32> -> vector<2x256xf32>
    %193 = arith.addf %188, %192 : vector<2x256xf32>
    %194 = vector.extract_strided_slice %117 {offsets = [30, 0], sizes = [2, 14], strides = [1, 1]} : vector<32x14xbf16> to vector<2x14xbf16>
    %c15 = arith.constant 15 : index
    %c0_82 = arith.constant 0 : index
    %c0_83 = arith.constant 0 : index
    %195 = vector.load %arg3[%c15, %c0_82, %c0_83] : memref<16x14x256xbf16, #tpu.memory_space<vmem>>, vector<1x14x256xbf16>
    %196 = vector.shape_cast %195 : vector<1x14x256xbf16> to vector<14x256xbf16>
    %cst_84 = arith.constant dense<0.000000e+00> : vector<2x256xf32>
    %197 = tpu.matmul %194, %196, %cst_84 {dimension_numbers = #tpu.dot_dimension_numbers<[1], [0], [0], [1], [0, 0, 1, 1], [], []>} : vector<2x14xbf16>, vector<14x256xbf16>, vector<2x256xf32> -> vector<2x256xf32>
    %198 = arith.addf %193, %197 : vector<2x256xf32>
    %c36 = arith.constant 36 : index
    %c0_85 = arith.constant 0 : index
    %199 = vector.load %arg1[%c36, %c0_85] : memref<48x256xf32, #tpu.memory_space<vmem>>, vector<1x256xf32>
    %200 = vector.broadcast %199 : vector<1x256xf32> to vector<2x256xf32>
    %201 = arith.addf %198, %200 : vector<2x256xf32>
    %cst_86 = arith.constant 0.000000e+00 : f32
    %202 = vector.broadcast %cst_86 : f32 to vector<2x256xf32>
    %203 = arith.maximumf %201, %202 : vector<2x256xf32>
    %c32_87 = arith.constant 32 : index
    %c0_88 = arith.constant 0 : index
    %204 = vector.load %arg2[%c32_87, %c0_88] : memref<416x64xbf16, #tpu.memory_space<vmem>>, vector<256x32xbf16>
    %205 = arith.truncf %203 : vector<2x256xf32> to vector<2x256xbf16>
    %cst_89 = arith.constant dense<0.000000e+00> : vector<2x32xf32>
    %206 = tpu.matmul %205, %204, %cst_89 {dimension_numbers = #tpu.dot_dimension_numbers<[1], [0], [0], [1], [0, 0, 1, 1], [], []>} : vector<2x256xbf16>, vector<256x32xbf16>, vector<2x32xf32> -> vector<2x32xf32>
    %c37 = arith.constant 37 : index
    %c0_90 = arith.constant 0 : index
    %207 = vector.load %arg1[%c37, %c0_90] : memref<48x256xf32, #tpu.memory_space<vmem>>, vector<1x32xf32>
    %208 = vector.broadcast %207 : vector<1x32xf32> to vector<2x32xf32>
    %209 = arith.addf %206, %208 : vector<2x32xf32>
    %cst_91 = arith.constant 0.000000e+00 : f32
    %210 = vector.broadcast %cst_91 : f32 to vector<2x32xf32>
    %211 = arith.maximumf %209, %210 : vector<2x32xf32>
    %c288 = arith.constant 288 : index
    %c0_92 = arith.constant 0 : index
    %212 = vector.load %arg2[%c288, %c0_92] : memref<416x64xbf16, #tpu.memory_space<vmem>>, vector<32x64xbf16>
    %213 = arith.truncf %211 : vector<2x32xf32> to vector<2x32xbf16>
    %cst_93 = arith.constant dense<0.000000e+00> : vector<2x64xf32>
    %214 = tpu.matmul %213, %212, %cst_93 {dimension_numbers = #tpu.dot_dimension_numbers<[1], [0], [0], [1], [0, 0, 1, 1], [], []>} : vector<2x32xbf16>, vector<32x64xbf16>, vector<2x64xf32> -> vector<2x64xf32>
    %c38 = arith.constant 38 : index
    %c0_94 = arith.constant 0 : index
    %215 = vector.load %arg1[%c38, %c0_94] : memref<48x256xf32, #tpu.memory_space<vmem>>, vector<1x64xf32>
    %216 = vector.broadcast %215 : vector<1x64xf32> to vector<2x64xf32>
    %217 = arith.addf %214, %216 : vector<2x64xf32>
    %cst_95 = arith.constant 0.000000e+00 : f32
    %218 = vector.broadcast %cst_95 : f32 to vector<2x64xf32>
    %219 = arith.maximumf %217, %218 : vector<2x64xf32>
    %c320 = arith.constant 320 : index
    %c0_96 = arith.constant 0 : index
    %220 = vector.load %arg2[%c320, %c0_96] : memref<416x64xbf16, #tpu.memory_space<vmem>>, vector<64x32xbf16>
    %221 = arith.truncf %219 : vector<2x64xf32> to vector<2x64xbf16>
    %cst_97 = arith.constant dense<0.000000e+00> : vector<2x32xf32>
    %222 = tpu.matmul %221, %220, %cst_97 {dimension_numbers = #tpu.dot_dimension_numbers<[1], [0], [0], [1], [0, 0, 1, 1], [], []>} : vector<2x64xbf16>, vector<64x32xbf16>, vector<2x32xf32> -> vector<2x32xf32>
    %c39 = arith.constant 39 : index
    %c0_98 = arith.constant 0 : index
    %223 = vector.load %arg1[%c39, %c0_98] : memref<48x256xf32, #tpu.memory_space<vmem>>, vector<1x32xf32>
    %224 = vector.broadcast %223 : vector<1x32xf32> to vector<2x32xf32>
    %225 = arith.addf %222, %224 : vector<2x32xf32>
    %226 = arith.addf %225, %211 : vector<2x32xf32>
    %cst_99 = arith.constant dense<0.000000e+00> : vector<2xf32>
    %227 = vector.multi_reduction <add>, %226, %cst_99 [1] : vector<2x32xf32> to vector<2xf32>
    %228 = vector.shape_cast %227 : vector<2xf32> to vector<2x1xf32>
    %cst_100 = arith.constant 3.200000e+01 : f32
    %229 = vector.broadcast %cst_100 : f32 to vector<2x1xf32>
    %230 = arith.divf %228, %229 : vector<2x1xf32>
    %231 = vector.broadcast %230 : vector<2x1xf32> to vector<2x32xf32>
    %232 = arith.subf %226, %231 : vector<2x32xf32>
    %233 = arith.mulf %232, %232 : vector<2x32xf32>
    %cst_101 = arith.constant dense<0.000000e+00> : vector<2xf32>
    %234 = vector.multi_reduction <add>, %233, %cst_101 [1] : vector<2x32xf32> to vector<2xf32>
    %235 = vector.shape_cast %234 : vector<2xf32> to vector<2x1xf32>
    %cst_102 = arith.constant 3.200000e+01 : f32
    %236 = vector.broadcast %cst_102 : f32 to vector<2x1xf32>
    %237 = arith.divf %235, %236 : vector<2x1xf32>
    %cst_103 = arith.constant 9.99999974E-6 : f32
    %238 = vector.broadcast %cst_103 : f32 to vector<2x1xf32>
    %239 = arith.addf %237, %238 : vector<2x1xf32>
    %240 = math.rsqrt %239 : vector<2x1xf32>
    %241 = vector.broadcast %240 : vector<2x1xf32> to vector<2x32xf32>
    %242 = arith.mulf %232, %241 : vector<2x32xf32>
    %c40 = arith.constant 40 : index
    %c0_104 = arith.constant 0 : index
    %243 = vector.load %arg1[%c40, %c0_104] : memref<48x256xf32, #tpu.memory_space<vmem>>, vector<1x32xf32>
    %244 = vector.broadcast %243 : vector<1x32xf32> to vector<2x32xf32>
    %245 = arith.mulf %242, %244 : vector<2x32xf32>
    %c41 = arith.constant 41 : index
    %c0_105 = arith.constant 0 : index
    %246 = vector.load %arg1[%c41, %c0_105] : memref<48x256xf32, #tpu.memory_space<vmem>>, vector<1x32xf32>
    %247 = vector.broadcast %246 : vector<1x32xf32> to vector<2x32xf32>
    %248 = arith.addf %245, %247 : vector<2x32xf32>
    %c384 = arith.constant 384 : index
    %c0_106 = arith.constant 0 : index
    %249 = vector.load %arg2[%c384, %c0_106] : memref<416x64xbf16, #tpu.memory_space<vmem>>, vector<32x16xbf16>
    %250 = arith.truncf %248 : vector<2x32xf32> to vector<2x32xbf16>
    %cst_107 = arith.constant dense<0.000000e+00> : vector<2x16xf32>
    %251 = tpu.matmul %250, %249, %cst_107 {dimension_numbers = #tpu.dot_dimension_numbers<[1], [0], [0], [1], [0, 0, 1, 1], [], []>} : vector<2x32xbf16>, vector<32x16xbf16>, vector<2x16xf32> -> vector<2x16xf32>
    %c42 = arith.constant 42 : index
    %c0_108 = arith.constant 0 : index
    %252 = vector.load %arg1[%c42, %c0_108] : memref<48x256xf32, #tpu.memory_space<vmem>>, vector<1x16xf32>
    %253 = vector.broadcast %252 : vector<1x16xf32> to vector<2x16xf32>
    %254 = arith.addf %251, %253 : vector<2x16xf32>
    %255 = tpu.concatenate %248, %254 in 1 : vector<2x32xf32>, vector<2x16xf32> -> vector<2x48xf32>
    %c0_109 = arith.constant 0 : index
    %c0_110 = arith.constant 0 : index
    %256 = vector.load %arg4[%c0_109, %c0_110] : memref<2x48xf32, #tpu.memory_space<vmem>>, vector<2x48xf32>
    tpu.vector_store %arg4[%c0_109, %c0_110], %255 {strides = array<i32>} : memref<2x48xf32, #tpu.memory_space<vmem>>, vector<2x48xf32>,
    return
  }
}

</mosaic_0001>

<bundles_post_ra>
// kernel: eeg_encoder_forward.1
= control target key start
LH: loop header
LB: loop body
LE: loop exit
PB: predicated region body
PF: predicated region fallthrough
CT: control target
= control target key end

     0   :  { %vm48_vm0 = vcmask 1046528   ;;  %vm41_vm1 = vcmask 113664   ;;  %s3064_s0 = inlined_call_operand.vmem [shape: f32[32,14], index: 0, kind: input, shape index: {}]   ;;  %s3065_s1 = inlined_call_operand.vmem [shape: f32[48,256], index: 1, kind: input, shape index: {}]   ;;  %s3066_s2 = inlined_call_operand.vmem [shape: bf16[416,64], index: 2, kind: input, shape index: {}]   ;;  %s3067_s3 = inlined_call_operand.vmem [shape: bf16[16,14,256], index: 3, kind: input, shape index: {}]   ;;  %s3068_s4 = inlined_call_operand.hbm [shape: f32[2,48], index: 4, kind: output, shape index: {}]  }
   0x1   :  { %v2426_v0 = vld [vmem:[%s3066_s2] sm:$0x7f]   ;;  %v20_v2 = vld [vmem:[%s3064_s0 + $0x8] sm:$0xff]  ;;  %v24_v5 = vld [vmem:[%s3065_s1 + $0x10] sm:$0xff] }
   0x2   :  { %v19_v1 = vld [vmem:[%s3064_s0] sm:$0xff]  ;;  %2399 = vmatprep.subr.msk.bf16.mxu0 %vm48_vm0, %v2426_v0  ;;  %v50_v4 = vsel %vm48_vm0, %v2426_v0, 0  ;;  %v21_v7 = vld [vmem:[%s3064_s0 + $0x10] sm:$0xff]  ;;  %v22_v8 = vld [vmem:[%s3064_s0 + $0x18] sm:$0xff]  ;;  %v2628_v9 = vadd.f32 %v24_v5, %v20_v2 }
   0x3   :  { %v23_v3 = vld [vmem:[%s3065_s1] sm:$0xff]  ;;  %2328 = vmatpush3.bf16.msra.mxu0 %v50_v4  ;;  %v26_v11 = vld [vmem:[%s3065_s1 + $0x30] sm:$0xff] }
   0x4   :  { %v2620_v6 = vadd.f32 %v23_v3, %v19_v1  ;;  %v25_v10 = vld [vmem:[%s3065_s1 + $0x20] sm:$0xff]  ;;  %v2638_v13 = vadd.f32 %v26_v11, %v22_v8 }
   0x5   :  { %v2636_v12 = vadd.f32 %v25_v10, %v21_v7 }
   0x6   :  { %v31_v14 = vpack.c.bf16 %v2628_v9, %v2620_v6 }
   0x7   :  { %v32_v15 = vpack.c.bf16 %v2638_v13, %v2636_v12 }
   0x8   :  { %2329 = vmatprep.mubr.msk.bf16.mxu0 %vm41_vm1, %v31_v14 }
   0x9   :  { %2330 = vmatmul.mubr.msk.bf16.vlgmr.msra.gmra.mrb[0].mxu0 %vm41_vm1, %v32_v15 }
   0xa   :  { %9 = vsyncpa [#allocation3], 0  ;;  %v35_v17 = vld [vmem:[%s3065_s1 + $0x40] ss:$0 sm:$0xff]  ;;  %vm184_vm2 = vcmask 64512   ;;  %s2566_s8 = smov 112   ;;  %v101_v31 = vlaneseq }
   0xb   :  { %v2567_v41 = vmov -1e+30   ;;  %vm246_vm6 = vcmask 261120   ;;  %s2568_s9 = smov 96   ;;  %s2569_s10 = smov 104   ;;  %vm561_vm8 = vcmask 130048  }
   0xc   :  { %v2663_v32 = vshrl.u32 %v101_v31, 7  ;;  %v107_v34 = vand.u32 127, %v101_v31  ;;  %s2570_s11 = smov 120   ;;  %s2571_s12 = smov 88   ;;  %vm2575_vm9 = vmmov 0   ;;  %vm1990_vm10 = vcmask 523264  }
   0xd   :  { %s2572_s15 = smov 8   ;;  %vm2035_vm11 = vcmask 254976   ;;  %vm2120_vm12 = vcmask 386048  }
   0xe   :  { %v104_v33 = vadd.s32 16, %v2663_v32  ;;  %v103_v35 = vadd.s32 8, %v2663_v32  ;;  %v160_v37 = vand.u32 1, %v107_v34  ;;  %v112_v38 = vand.u32 1, %v2663_v32 }
   0xf   :  { %v105_v39 = vadd.s32 24, %v2663_v32 }
  0x10   :  { %v126_v36 = vand.u32 1, %v104_v33  ;;  %v119_v40 = vand.u32 1, %v103_v35  ;;  %vm168_vm4 = vcmp.eq.s32.totalorder %v112_v38, %v160_v37 }
  0x11   :  { %v133_v43 = vand.u32 1, %v105_v39  ;;  %v2671_v44 = vsel %vm168_vm4, 0.0, %v2567_v41 }
  0x12   :  { %vm170_vm3 = vcmp.eq.s32.totalorder %v126_v36, %v160_v37  ;;  %vm169_vm5 = vcmp.eq.s32.totalorder %v119_v40, %v160_v37 }
  0x13   :  { %v2669_v42 = vsel %vm170_vm3, 0.0, %v2567_v41  ;;  %v2674_v48 = vsel %vm169_vm5, 0.0, %v2567_v41  ;;  %vm171_vm7 = vcmp.eq.s32.totalorder %v133_v43, %v160_v37 }
  0x14   :  { %v2680_v55 = vsel %vm171_vm7, 0.0, %v2567_v41 }
  0xdc   :  { %v2331_v16 = vpop.f32.mrb[0].mxu0 }
  0xdd   :  { %v86_v18 = vpop.f32.mrb[1].mxu0  ;;  %v95_v20 = vadd.f32 %v2331_v16, %v35_v17 }
  0xde   :  { %v2332_v19 = vpop.f32.mrb[2].mxu0  ;;  %v87_v23 = vadd.f32 %v86_v18, %v35_v17 }
  0xdf   :  { %v98_v21 = vadd.f32 %v2332_v19, %v35_v17  ;;  %v89_v22 = vpop.f32.mrb[3].mxu0 }
  0xe0   :  { %v90_v24 = vadd.f32 %v89_v22, %v35_v17 }
  0xe1   :  { %v2649_v25 = vpack.c.bf16 %v98_v21, %v95_v20 }
  0xe2   :  { %v2651_v26 = vpack.c.bf16 %v90_v24, %v87_v23 }
  0xe4   :  { %180 = vrot.lane.b32.xlu0 %v2651_v26, %s2566_s8  ;;  %2337 = vmatprep.mubr.msk.bf16.mxu1 %vm184_vm2, %v2651_v26 }
  0xe8   :  { %182 = vrot.lane.b32.xlu0 %v2649_v25, %s2566_s8 }
 0x156   :  { %v181_v27 = vpop.permute.xlu0 %180 }
 0x157   :  { %2400 = vmatprep.subr.msk.bf16.mxu1 %vm184_vm2, %v181_v27  ;;  %v192_v28 = vsel %vm184_vm2, %v181_v27, 0 }
 0x158   :  { %2334 = vmatpush3.bf16.xpose.msra.mxu1 %v192_v28 }
 0x15a   :  { %v183_v29 = vpop.permute.xlu0 %182 }
 0x15b   :  { %2401 = vmatprep.subr.msk.bf16.mxu1 %vm184_vm2, %v183_v29  ;;  %v195_v30 = vsel %vm184_vm2, %v183_v29, 0 }
 0x160   :  { %2336 = vmatpush3.bf16.xpose.msra.mxu1 %v195_v30 }
 0x167   :  { %2338 = vmatmul.mubr.msk.bf16.vlgmr.msra.gmra.mrb[0].mxu1 %vm184_vm2, %v2649_v25 }
 0x23a   :  { %v2339_v45 = vpop.f32.mrb[0].mxu1 }
 0x23b   :  { %v240_v46 = vadd.f32 %v2339_v45, %v2669_v42  ;;  %v231_v47 = vpop.f32.mrb[1].mxu1 }
 0x23c   :  { %v232_v49 = vadd.f32 %v231_v47, %v2671_v44  ;;  %v2340_v50 = vpop.f32.mrb[2].mxu1 }
 0x23d   :  { %v234_v51 = vpop.f32.mrb[3].mxu1  ;;  %v253_v52 = vsel %vm246_vm6, %v240_v46, -inf  ;;  %v243_v56 = vadd.f32 %v2340_v50, %v2680_v55 }
 0x23e   :  { %v235_v53 = vadd.f32 %v234_v51, %v2674_v48  ;;  %254 = vmax.xlane.f32.xlu0 %v253_v52  ;;  %v247_v54 = vsel %vm246_vm6, %v232_v49, -inf }
 0x23f   :  { %248 = vmax.xlane.f32.xlu1 %v247_v54  ;;  %v256_v58 = vsel %vm246_vm6, %v243_v56, -inf }
 0x240   :  { %v250_v57 = vsel %vm246_vm6, %v235_v53, -inf }
 0x243   :  { %251 = vmax.xlane.f32.xlu1 %v250_v57 }
 0x247   :  { %257 = vmax.xlane.f32.xlu1 %v256_v58 }
 0x254   :  { %295 = vrot.lane.b32.xlu0 %v2649_v25, %s2568_s9 }
 0x258   :  { %293 = vrot.lane.b32.xlu1 %v2651_v26, %s2568_s9  ;;  %s2576_s9 = smov 32  }
 0x2cb   :  { %v255_v59 = vpop.xlane.xlu0 %254 }
 0x2cc   :  { %v261_v60 = vsub.f32 %v240_v46, %v255_v59  ;;  %v249_v61 = vpop.xlane.xlu1 %248 }
 0x2cd   :  { %v259_v62 = vsub.f32 %v232_v49, %v249_v61 }
 0x2ce   :  { %v267_v63 = vmul.f32 1.442695, %v261_v60 }
 0x2cf   :  { %v263_v0 = vmul.f32 1.442695, %v259_v62  ;;  %v296_v11 = vpop.permute.xlu0 %295 }
 0x2d0   :  { %2500 = vpow2.f32 %v267_v63  ;;  %v252_v1 = vpop.xlane.xlu1 %251 }
 0x2d1   :  { %2502 = vpow2.f32 %v263_v0  ;;  %v260_v2 = vsub.f32 %v235_v53, %v252_v1 }
 0x2d3   :  { %v265_v5 = vmul.f32 1.442695, %v260_v2 }
 0x2d4   :  { %v258_v3 = vpop.xlane.xlu1 %257 }
 0x2d5   :  { %v262_v4 = vsub.f32 %v243_v56, %v258_v3 }
 0x2d7   :  { %v269_v7 = vmul.f32 1.442695, %v262_v4 }
 0x2d8   :  { %v294_v8 = vpop.permute.xlu1 %293 }
 0x2d9   :  { %2504 = vpow2.f32 %v269_v7  ;;  %2341 = vmatprep.subr.bf16.mxu0 %v294_v8 }
 0x2da   :  { %v2501_v10 = vpop.eup %2500  ;;  %2342 = vmatpush3.bf16.msra.mxu0 %v294_v8  ;;  %2506 = vpow2.f32 %v265_v5 }
 0x2db   :  { %2343 = vmatprep.subr.bf16.mxu0 %v296_v11  ;;  %v277_v14 = vsel %vm246_vm6, %v2501_v10, 0.0  ;;  %v2503_v15 = vpop.eup %2502 }
 0x2dc   :  { %278 = vadd.xlane.f32.xlu1 %v277_v14  ;;  %v271_v16 = vsel %vm246_vm6, %v2503_v15, 0.0 }
 0x2de   :  { %2344 = vmatpush3.bf16.msra.mxu0 %v296_v11 }
 0x2e0   :  { %272 = vadd.xlane.f32.xlu1 %v271_v16 }
 0x2e3   :  { %v2505_v17 = vpop.eup %2504 }
 0x2e4   :  { %v280_v18 = vsel %vm246_vm6, %v2505_v17, 0.0  ;;  %v2507_v19 = vpop.eup %2506 }
 0x2e5   :  { %281 = vadd.xlane.f32.xlu1 %v280_v18  ;;  %v274_v20 = vsel %vm246_vm6, %v2507_v19, 0.0 }
 0x2e9   :  { %275 = vadd.xlane.f32.xlu1 %v274_v20 }
 0x2fa   :  { %358 = vrot.lane.b32.xlu1 %v2651_v26, %s2569_s10 }
 0x2fe   :  { %360 = vrot.lane.b32.xlu1 %v2649_v25, %s2569_s10  ;;  %s2577_s10 = smov [#allocation2]  }
 0x302   :  { %354 = vrot.lane.b32.xlu1 %v2651_v26, %s2570_s11 }
 0x306   :  { %356 = vrot.lane.b32.xlu1 %v2649_v25, %s2570_s11  ;;  %s2128_s11 = sshll.u32 %s2577_s10, 4  ;;  %s2129_s11 = int_to_ptr.vmem [resolvable:$true] %s2128_s11 }
 0x307   :  { %p2547_p1 = scmp.lt.s32.totalorder %s2129_s11, %s2129_s11 }
 0x369   :  { %v279_v21 = vpop.xlane.xlu1 %278 }
 0x36d   :  { %v273_v22 = vpop.xlane.xlu1 %272 }
 0x372   :  { %v282_v23 = vpop.xlane.xlu1 %281 }
 0x373   :  { %2508 = vrcp.f32 %v282_v23 }
 0x374   :  { %2510 = vrcp.f32 %v273_v22 }
 0x375   :  { %2512 = vrcp.f32 %v279_v21 }
 0x376   :  { %v276_v24 = vpop.xlane.xlu1 %275 }
 0x377   :  { %2514 = vrcp.f32 %v276_v24 }
 0x37a   :  { %v359_v27 = vpop.permute.xlu1 %358 }
 0x37b   :  { %2402 = vmatprep.subr.msk.bf16.mxu0 %vm184_vm2, %v359_v27  ;;  %v369_v40 = vsel %vm184_vm2, %v359_v27, 0 }
 0x37d   :  { %v2509_v28 = vpop.eup %2508 }
 0x37e   :  { %v2511_v29 = vpop.eup %2510  ;;  %v290_v33 = vmul.f32 %v2509_v28, %v2505_v17  ;;  %v361_v34 = vpop.permute.xlu1 %360 }
 0x37f   :  { %v2513_v30 = vpop.eup %2512  ;;  %v287_v35 = vmul.f32 %v2511_v29, %v2503_v15  ;;  %v372_v43 = vsel %vm184_vm2, %v361_v34, 0 }
 0x380   :  { %v289_v37 = vmul.f32 %v2513_v30, %v2501_v10 }
 0x381   :  { %v2515_v31 = vpop.eup %2514 }
 0x382   :  { %v288_v36 = vmul.f32 %v2515_v31, %v2507_v19  ;;  %v292_v39 = vpack.c.bf16 %v290_v33, %v289_v37  ;;  %v355_v41 = vpop.permute.xlu1 %354  ;;  %v2427_v37 = vld [vmem:[%s3066_s2 + $0x8] sm:$0xff]  }
 0x384   :  { %v291_v38 = vpack.c.bf16 %v288_v36, %v287_v35 }
 0x386   :  { %2345 = vmatprep.mubr.msk.bf16.mxu0 %vm246_vm6, %v291_v38  ;;  %v357_v45 = vpop.permute.xlu1 %356 }
 0x387   :  { %2346 = vmatmul.mubr.msk.bf16.vlgmr.msra.gmra.mrb[4].mxu0 %vm246_vm6, %v292_v39 }
 0x388   :  { %2350 = vmatpush3.bf16.xpose.msra.mxu0 %v369_v40  ;;  %2353 = vmatprep.mubr.msk.bf16.mxu0 %vm184_vm2, %v355_v41 }
 0x389   :  { %2403 = vmatprep.subr.msk.bf16.mxu0 %vm184_vm2, %v361_v34 }
 0x390   :  { %2352 = vmatpush3.bf16.xpose.msra.mxu0 %v372_v43 }
 0x397   :  { %2354 = vmatmul.mubr.msk.bf16.vlgmr.msra.gmra.mrb[8].mxu0 %vm184_vm2, %v357_v45 }
 0x45a   :  { %v2703_v46 = vpop.f32.mrb[4].mxu0 }
 0x45b   :  { %v2705_v47 = vpop.f32.mrb[5].mxu0 }
 0x45c   :  { %v2707_v49 = vpop.f32.mrb[6].mxu0 }
 0x45d   :  { %v2709_v50 = vpop.f32.mrb[7].mxu0 }
 0x46a   :  { %v2355_v51 = vpop.f32.mrb[8].mxu0 }
 0x46b   :  { %v408_v52 = vpop.f32.mrb[9].mxu0  ;;  %v417_v57 = vadd.f32 %v2355_v51, %v2669_v42 }
 0x46c   :  { %v409_v53 = vadd.f32 %v408_v52, %v2671_v44  ;;  %v2356_v54 = vpop.f32.mrb[10].mxu0 }
 0x46d   :  { %v411_v56 = vpop.f32.mrb[11].mxu0  ;;  %v420_v61 = vadd.f32 %v2356_v54, %v2680_v55  ;;  %v429_v62 = vsel %vm246_vm6, %v417_v57, -inf }
 0x46e   :  { %v412_v58 = vadd.f32 %v411_v56, %v2674_v48  ;;  %v423_v59 = vsel %vm246_vm6, %v409_v53, -inf }
 0x46f   :  { %424 = vmax.xlane.f32.xlu0 %v423_v59  ;;  %v432_v63 = vsel %vm246_vm6, %v420_v61, -inf }
 0x470   :  { %v426_v60 = vsel %vm246_vm6, %v412_v58, -inf }
 0x471   :  { %427 = vmax.xlane.f32.xlu1 %v426_v60 }
 0x473   :  { %430 = vmax.xlane.f32.xlu0 %v429_v62 }
 0x477   :  { %433 = vmax.xlane.f32.xlu0 %v432_v63 }
 0x4fc   :  { %v425_v44 = vpop.xlane.xlu0 %424 }
 0x4fd   :  { %v435_v0 = vsub.f32 %v409_v53, %v425_v44 }
 0x4fe   :  { %v428_v1 = vpop.xlane.xlu1 %427 }
 0x4ff   :  { %v439_v48 = vmul.f32 1.442695, %v435_v0  ;;  %v436_v3 = vsub.f32 %v412_v58, %v428_v1 }
 0x500   :  { %v431_v42 = vpop.xlane.xlu0 %430 }
 0x501   :  { %v437_v2 = vsub.f32 %v417_v57, %v431_v42  ;;  %v441_v8 = vmul.f32 1.442695, %v436_v3 }
 0x503   :  { %v443_v4 = vmul.f32 1.442695, %v437_v2 }
 0x504   :  { %v434_v5 = vpop.xlane.xlu0 %433 }
 0x505   :  { %2516 = vpow2.f32 %v443_v4  ;;  %v438_v7 = vsub.f32 %v420_v61, %v434_v5 }
 0x506   :  { %2518 = vpow2.f32 %v439_v48 }
 0x507   :  { %v445_v55 = vmul.f32 1.442695, %v438_v7 }
 0x509   :  { %2520 = vpow2.f32 %v445_v55 }
 0x50a   :  { %2522 = vpow2.f32 %v441_v8 }
 0x50f   :  { %v2517_v10 = vpop.eup %2516 }
 0x510   :  { %v453_v11 = vsel %vm246_vm6, %v2517_v10, 0.0  ;;  %v2519_v14 = vpop.eup %2518 }
 0x511   :  { %454 = vadd.xlane.f32.xlu1 %v453_v11  ;;  %v447_v16 = vsel %vm246_vm6, %v2519_v14, 0.0 }
 0x513   :  { %v2521_v15 = vpop.eup %2520 }
 0x514   :  { %v456_v17 = vsel %vm246_vm6, %v2521_v15, 0.0  ;;  %v2523_v18 = vpop.eup %2522 }
 0x515   :  { %448 = vadd.xlane.f32.xlu1 %v447_v16  ;;  %457 = vadd.xlane.f32.xlu0 %v456_v17  ;;  %v450_v19 = vsel %vm246_vm6, %v2523_v18, 0.0 }
 0x519   :  { %451 = vadd.xlane.f32.xlu0 %v450_v19 }
 0x526   :  { %469 = vrot.lane.b32.xlu1 %v2651_v26, %s2571_s12 }
 0x52f   :  { %471 = vrot.lane.b32.xlu0 %v2649_v25, %s2571_s12  ;;  %s2542_s12 = scalar_lea.vmem %s2129_s11, 32 }
 0x530   :  { %p2543_p0 = scmp.ne.s32.totalorder %s2129_s11, %s2542_s12  ;;  %p2548_p2 = scmp.lt.s32.totalorder %s2542_s12, %s2542_s12 }
 0x532   :  { %p2549_p3 = por %p2548_p2, %p2547_p1 }
 0x534   :  { %p2550_p4 = pnand %p2549_p3, %p2543_p0 }
 0x59e   :  { %v455_v20 = vpop.xlane.xlu1 %454 }
 0x5a2   :  { %v449_v21 = vpop.xlane.xlu1 %448  ;;  %v458_v22 = vpop.xlane.xlu0 %457 }
 0x5a3   :  { %2524 = vrcp.f32 %v458_v22 }
 0x5a4   :  { %2526 = vrcp.f32 %v449_v21 }
 0x5a5   :  { %2528 = vrcp.f32 %v455_v20 }
 0x5a6   :  { %v470_v23 = vpop.permute.xlu1 %469  ;;  %v452_v24 = vpop.xlane.xlu0 %451 }
 0x5a7   :  { %2530 = vrcp.f32 %v452_v24  ;;  %2357 = vmatprep.subr.bf16.mxu1 %v470_v23 }
 0x5a8   :  { %2358 = vmatpush3.bf16.msra.mxu1 %v470_v23 }
 0x5aa   :  { %v472_v27 = vpop.permute.xlu0 %471 }
 0x5ab   :  { %2359 = vmatprep.subr.bf16.mxu1 %v472_v27 }
 0x5ac   :  { %2360 = vmatpush3.bf16.msra.mxu1 %v472_v27 }
 0x5ad   :  { %v2525_v28 = vpop.eup %2524  ;;  %2365 = vmatprep.subr.bf16.mxu1 %v2427_v37 }
 0x5ae   :  { %v2527_v29 = vpop.eup %2526  ;;  %v466_v31 = vmul.f32 %v2525_v28, %v2521_v15 }
 0x5af   :  { %v2529_v30 = vpop.eup %2528  ;;  %v463_v25 = vmul.f32 %v2527_v29, %v2519_v14 }
 0x5b0   :  { %v465_v34 = vmul.f32 %v2529_v30, %v2517_v10 }
 0x5b1   :  { %v2531_v26 = vpop.eup %2530 }
 0x5b2   :  { %v464_v33 = vmul.f32 %v2531_v26, %v2523_v18  ;;  %v468_v36 = vpack.c.bf16 %v466_v31, %v465_v34  ;;  %v2431_v26 = vld [vmem:[%s3067_s3 + $0x4] ss:$8 sps:$4 sm:$0x7f]   ;;  %v2433_v31 = vld [vmem:[%s3067_s3] ss:$8 sps:$4 sm:$0x7f]  }
 0x5b3   :  { %v763_v34 = vsel %vm48_vm0, %v2433_v31, 0 }
 0x5b4   :  { %v467_v35 = vpack.c.bf16 %v464_v33, %v463_v25  ;;  %v2428_v25 = vld [vmem:[%s3067_s3 + $0x14] ss:$8 sps:$4 sm:$0x7f]   ;;  %v2430_v33 = vld [vmem:[%s3067_s3 + $0x10] ss:$8 sps:$4 sm:$0x7f]  }
 0x5b5   :  { %2154 = vmatprep.subr.msk.bf16.mxu0 %vm48_vm0, %v2428_v25 }
 0x5b6   :  { %2361 = vmatprep.mubr.msk.bf16.mxu1 %vm246_vm6, %v467_v35  ;;  %v705_v35 = vsel %vm48_vm0, %v2430_v33, 0  ;;  %v2461_v33 = vld [vmem:[%s3067_s3 + $0xb4] ss:$8 sps:$4 sm:$0x7f]  }
 0x5b7   :  { %2362 = vmatmul.mubr.msk.bf16.vlgmr.msra.gmra.mrb[4].mxu1 %vm246_vm6, %v468_v36  ;;  %711 = vmatpush1.bf16.msra.mxu0 %v705_v35  ;;  %v2573_v36 = vmov 0  }
 0x5b8   :  { %2366 = vmatpush3.bf16.msra.mxu1 %v2427_v37  ;;  %742 = vmatprep.mubr.bf16.mxu0 %v2573_v36  ;;  %v2437_v37 = vld [vmem:[%s3067_s3 + $0x34] ss:$8 sps:$4 sm:$0x7f]  }
 0x5b9   :  { %2158 = vmatprep.subr.msk.bf16.mxu1 %vm48_vm0, %v2431_v26 }
 0x68a   :  { %v2363_v38 = vpop.f32.mrb[4].mxu1 }
 0x68b   :  { %v515_v39 = vpop.f32.mrb[5].mxu1 }
 0x68c   :  { %v2364_v40 = vpop.f32.mrb[6].mxu1 }
 0x68d   :  { %v2421_v41 = vpack.i.bf16 %v2364_v40, %v2363_v38  ;;  %v518_v43 = vpop.f32.mrb[7].mxu1  ;;  %v2434_v38 = vld [vmem:[%s3067_s3 + $0x24] ss:$8 sps:$4 sm:$0x7f]  }
 0x68e   :  { %v2416_v45 = vpack.i.bf16 %v518_v43, %v515_v39  ;;  %2164 = vmatprep.subr.msk.bf16.mxu0 %vm48_vm0, %v2434_v38  ;;  %v2458_v38 = vld [vmem:[%s3067_s3 + $0xa4] ss:$8 sps:$4 sm:$0x7f]  }
 0x690   :  { %2417 = vrot.lane.b32.xlu1 %v2416_v45, %s2572_s15 }
 0x694   :  { %2422 = vrot.lane.b32.xlu1 %v2421_v41, %s2572_s15 }
 0x702   :  { %v2418_v51 = vpop.permute.xlu1 %2417 }
 0x703   :  { %v2420_v52 = vunpack.i.h.bf16 %v2418_v51  ;;  %v2419_v53 = vunpack.i.l.bf16 %v2418_v51 }
 0x705   :  { %v547_v54 = vsel %vm184_vm2, %v2709_v50, %v2420_v52  ;;  %v546_v56 = vsel %vm184_vm2, %v2705_v47, %v2419_v53  ;;  %v554_v50 = vld [vmem:[%s3065_s1 + $0x41] ss:$0 sm:$0xff]  ;;  %v2790_v53 = vld [vmem:[%s3065_s1 + $0x42] ss:$0 sm:$0xff] }
 0x706   :  { %v550_v57 = vpack.c.bf16 %v547_v54, %v546_v56  ;;  %v2423_v58 = vpop.permute.xlu1 %2422 }
 0x707   :  { %v2425_v59 = vunpack.i.h.bf16 %v2423_v58  ;;  %v2424_v60 = vunpack.i.l.bf16 %v2423_v58 }
 0x708   :  { %2367 = vmatprep.mubr.msk.bf16.mxu1 %vm561_vm8, %v550_v57 }
 0x709   :  { %v549_v61 = vsel %vm184_vm2, %v2707_v49, %v2425_v59  ;;  %v548_v62 = vsel %vm184_vm2, %v2703_v46, %v2424_v60 }
 0x70a   :  { %v551_v63 = vpack.c.bf16 %v549_v61, %v548_v62  ;;  %v2796_v61 = vld [vmem:[%s3065_s1 + $0x43] ss:$0 sm:$0xff] }
 0x70c   :  { %2368 = vmatmul.mubr.msk.bf16.vlgmr.msra.gmra.mrb[8].mxu1 %vm561_vm8, %v551_v63 }
 0x70d   :  { %769 = vmatpush1.bf16.msra.mxu1 %v763_v34  ;;  %800 = vmatprep.mubr.bf16.mxu1 %v2573_v36 }
 0x70e   :  { %2170 = vmatprep.subr.msk.bf16.mxu1 %vm48_vm0, %v2437_v37 }
 0x7df   :  { %v2369_v44 = vpop.f32.mrb[8].mxu1 }
 0x7e0   :  { %v602_v47 = vpop.f32.mrb[9].mxu1  ;;  %v611_v0 = vadd.f32 %v2369_v44, %v554_v50 }
 0x7e1   :  { %v603_v1 = vadd.f32 %v602_v47, %v554_v50  ;;  %v2370_v42 = vpop.f32.mrb[10].mxu1 }
 0x7e2   :  { %v605_v2 = vpop.f32.mrb[11].mxu1  ;;  %v614_v4 = vadd.f32 %v2370_v42, %v554_v50  ;;  %v619_v5 = vadd.f32 %v611_v0, %v2636_v12 }
 0x7e3   :  { %v606_v48 = vadd.f32 %v605_v2, %v554_v50  ;;  %v617_v3 = vadd.f32 %v603_v1, %v2620_v6  ;;  %v2439_v50 = vld [vmem:[%s3067_s3 + $0x30] ss:$8 sps:$4 sm:$0x7f]   ;;  %v2436_v1 = vld [vmem:[%s3067_s3 + $0x20] ss:$8 sps:$4 sm:$0x7f]  }
 0x7e4   :  { %v627_v8 = vsel %vm41_vm1, %v619_v5, 0.0  ;;  %v620_v55 = vadd.f32 %v614_v4, %v2638_v13 }
 0x7e5   :  { %v621_v49 = vsel %vm41_vm1, %v617_v3, 0.0  ;;  %v618_v46 = vadd.f32 %v606_v48, %v2628_v9  ;;  %v889_v48 = vsel %vm48_vm0, %v2439_v50, 0  ;;  %v2472_v50 = vld [vmem:[%s3067_s3 + $0xe0] ss:$8 sps:$4 sm:$0x7f]  }
 0x7e6   :  { %622 = vadd.xlane.f32.xlu0 %v621_v49  ;;  %v630_v10 = vsel %vm41_vm1, %v620_v55, 0.0 }
 0x7e7   :  { %v624_v7 = vsel %vm41_vm1, %v618_v46, 0.0 }
 0x7e8   :  { %625 = vadd.xlane.f32.xlu1 %v624_v7  ;;  %v2445_v7 = vld [vmem:[%s3067_s3 + $0x50] ss:$8 sps:$4 sm:$0x7f]  }
 0x7ea   :  { %628 = vadd.xlane.f32.xlu0 %v627_v8  ;;  %v2442_v8 = vld [vmem:[%s3067_s3 + $0x40] ss:$8 sps:$4 sm:$0x7f]  }
 0x7ee   :  { %631 = vadd.xlane.f32.xlu0 %v630_v10  ;;  %v1017_v10 = vsel %vm48_vm0, %v2445_v7, 0  ;;  %v2483_v7 = vld [vmem:[%s3066_s2 + $0x28] sm:$0xff]  }
 0x873   :  { %v623_v6 = vpop.xlane.xlu0 %622 }
 0x874   :  { %v634_v11 = vmul.f32 0.071428575, %v623_v6  ;;  %v2449_v6 = vld [vmem:[%s3067_s3 + $0x74] ss:$8 sps:$4 sm:$0x7f]  }
 0x875   :  { %v626_v14 = vpop.xlane.xlu1 %625 }
 0x876   :  { %v638_v15 = vsub.f32 %v617_v3, %v634_v11  ;;  %v635_v16 = vmul.f32 0.071428575, %v626_v14  ;;  %v2443_v3 = vld [vmem:[%s3067_s3 + $0x54] ss:$8 sps:$4 sm:$0x7f]   ;;  %v953_v14 = vsel %vm48_vm0, %v2442_v8, 0 }
 0x877   :  { %v629_v9 = vpop.xlane.xlu0 %628  ;;  %v2484_v8 = vld [vmem:[%s3066_s2 + $0x70] sm:$0xff]  }
 0x878   :  { %v639_v17 = vsub.f32 %v618_v46, %v635_v16  ;;  %v636_v12 = vmul.f32 0.071428575, %v629_v9  ;;  %v642_v18 = vmul.f32 %v638_v15, %v638_v15  ;;  %v825_v46 = vsel %vm48_vm0, %v2436_v1, 0  ;;  %v2451_v16 = vld [vmem:[%s3067_s3 + $0x70] ss:$8 sps:$4 sm:$0x7f]  }
 0x879   :  { %v1593_v1 = vsel %vm48_vm0, %v2472_v50, 0 }
 0x87a   :  { %v2749_v19 = vsub.f32 %v619_v5, %v636_v12  ;;  %v646_v20 = vsel %vm41_vm1, %v642_v18, 0.0  ;;  %v643_v21 = vmul.f32 %v639_v17, %v639_v17  ;;  %v2440_v5 = vld [vmem:[%s3067_s3 + $0x44] ss:$8 sps:$4 sm:$0x7f]  }
 0x87b   :  { %647 = vadd.xlane.f32.xlu1 %v646_v20  ;;  %v632_v13 = vpop.xlane.xlu0 %631 }
 0x87c   :  { %v637_v22 = vmul.f32 0.071428575, %v632_v13  ;;  %v649_v23 = vsel %vm41_vm1, %v643_v21, 0.0  ;;  %v644_v24 = vmul.f32 %v2749_v19, %v2749_v19  ;;  %v1145_v21 = vsel %vm48_vm0, %v2451_v16, 0  ;;  %v2491_v16 = vld [vmem:[%s3066_s2 + $0x48] sm:$0xff]  }
 0x87d   :  { %650 = vadd.xlane.f32.xlu0 %v649_v23  ;;  %v2455_v13 = vld [vmem:[%s3067_s3 + $0x94] ss:$8 sps:$4 sm:$0x7f]  }
 0x87e   :  { %v2755_v27 = vsub.f32 %v620_v55, %v637_v22  ;;  %v652_v28 = vsel %vm41_vm1, %v644_v24, 0.0 }
 0x87f   :  { %653 = vadd.xlane.f32.xlu1 %v652_v28 }
 0x880   :  { %v645_v29 = vmul.f32 %v2755_v27, %v2755_v27 }
 0x882   :  { %v655_v30 = vsel %vm41_vm1, %v645_v29, 0.0 }
 0x883   :  { %656 = vadd.xlane.f32.xlu0 %v655_v30  ;;  %v2454_v30 = vld [vmem:[%s3067_s3 + $0x80] ss:$8 sps:$4 sm:$0x7f]  }
 0x884   :  { %v1208_v37 = vsel %vm48_vm0, %v2454_v30, 0 }
 0x908   :  { %v648_v39 = vpop.xlane.xlu1 %647 }
 0x909   :  { %v658_v40 = vmul.f32 0.071428575, %v648_v39 }
 0x90a   :  { %v651_v41 = vpop.xlane.xlu0 %650 }
 0x90b   :  { %v662_v43 = vadd.f32 1e-05, %v658_v40  ;;  %v659_v45 = vmul.f32 0.071428575, %v651_v41 }
 0x90c   :  { %v654_v60 = vpop.xlane.xlu1 %653  ;;  %v2463_v40 = vld [vmem:[%s3067_s3 + $0xb0] ss:$8 sps:$4 sm:$0x7f]   ;;  %v2460_v41 = vld [vmem:[%s3067_s3 + $0xa0] ss:$8 sps:$4 sm:$0x7f]  }
 0x90d   :  { %2532 = vrsqrt.f32 %v662_v43  ;;  %v663_v51 = vadd.f32 1e-05, %v659_v45  ;;  %v660_v44 = vmul.f32 0.071428575, %v654_v60  ;;  %v1401_v45 = vsel %vm48_vm0, %v2463_v40, 0 }
 0x90f   :  { %2534 = vrsqrt.f32 %v663_v51  ;;  %v664_v4 = vadd.f32 1e-05, %v660_v44  ;;  %v2467_v51 = vld [vmem:[%s3067_s3 + $0xd4] ss:$8 sps:$4 sm:$0x7f]  }
 0x910   :  { %v657_v56 = vpop.xlane.xlu0 %656 }
 0x911   :  { %v661_v62 = vmul.f32 0.071428575, %v657_v56  ;;  %v2466_v56 = vld [vmem:[%s3067_s3 + $0xc0] ss:$8 sps:$4 sm:$0x7f]  }
 0x913   :  { %v665_v42 = vadd.f32 1e-05, %v661_v62  ;;  %v2470_v62 = vld [vmem:[%s3067_s3 + $0xe4] ss:$8 sps:$4 sm:$0x7f]  }
 0x915   :  { %2536 = vrsqrt.f32 %v665_v42 }
 0x916   :  { %2538 = vrsqrt.f32 %v664_v4  ;;  %v2479_v4 = vld [vmem:[%s3066_s2 + $0x18] sm:$0xff]  }
 0x917   :  { %v2533_v52 = vpop.eup %2532 }
 0x918   :  { %v670_v54 = vmul.f32 %v2533_v52, %v638_v15  ;;  %v2446_v15 = vld [vmem:[%s3067_s3 + $0x64] ss:$8 sps:$4 sm:$0x7f]   ;;  %v1337_v52 = vsel %vm48_vm0, %v2460_v41, 0 }
 0x919   :  { %v2535_v57 = vpop.eup %2534 }
 0x91a   :  { %v675_v58 = vmul.f32 %v2790_v53, %v670_v54  ;;  %v671_v59 = vmul.f32 %v2535_v57, %v639_v17  ;;  %v2448_v17 = vld [vmem:[%s3067_s3 + $0x60] ss:$8 sps:$4 sm:$0x7f]   ;;  %v2469_v54 = vld [vmem:[%s3067_s3 + $0xd0] ss:$8 sps:$4 sm:$0x7f]  }
 0x91b   :  { %v1081_v24 = vsel %vm48_vm0, %v2448_v17, 0 }
 0x91c   :  { %v676_v63 = vmul.f32 %v2790_v53, %v671_v59  ;;  %v680_v47 = vadd.f32 %v2796_v61, %v675_v58  ;;  %v1529_v58 = vsel %vm48_vm0, %v2469_v54, 0  ;;  %v2473_v59 = vld [vmem:[%s3067_s3 + $0xf4] ss:$8 sps:$4 sm:$0x7f]  }
 0x91e   :  { %v681_v0 = vadd.f32 %v2796_v61, %v676_v63  ;;  %v2475_v63 = vld [vmem:[%s3067_s3 + $0xf0] ss:$8 sps:$4 sm:$0x7f]  }
 0x91f   :  { %v2537_v9 = vpop.eup %2536 }
 0x920   :  { %v2807_v2 = vpack.c.bf16 %v681_v0, %v680_v47  ;;  %v2539_v12 = vpop.eup %2538  ;;  %v673_v18 = vmul.f32 %v2537_v9, %v2755_v27  ;;  %v2452_v27 = vld [vmem:[%s3067_s3 + $0x84] ss:$8 sps:$4 sm:$0x7f]   ;;  %v1657_v47 = vsel %vm48_vm0, %v2475_v63, 0 }
 0x921   :  { %v672_v22 = vmul.f32 %v2539_v12, %v2749_v19  ;;  %v2457_v19 = vld [vmem:[%s3067_s3 + $0x90] ss:$8 sps:$4 sm:$0x7f]  }
 0x922   :  { %2159 = vmatmul.mubr.msk.bf16.vlgmr.msra.gmra.mrb[12].mxu1 %vm41_vm1, %v2807_v2  ;;  %v692_v49 = vrot.slane %v2807_v2, 1  ;;  %v876_v55 = vrot.slane %v2807_v2, 3  ;;  %v812_v11 = vrot.slane %v2807_v2, 2  ;;  %v1004_v20 = vrot.slane %v2807_v2, 5 }
 0x923   :  { %895 = vmatpush1.bf16.msra.mxu1 %v889_v48  ;;  %926 = vmatprep.mubr.bf16.mxu1 %v2573_v36  ;;  %v940_v23 = vrot.slane %v2807_v2, 4  ;;  %v678_v28 = vmul.f32 %v2790_v53, %v673_v18  ;;  %v677_v29 = vmul.f32 %v2790_v53, %v672_v22  ;;  %v1132_v31 = vrot.slane %v2807_v2, 7  ;;  %v2464_v53 = vld [vmem:[%s3067_s3 + $0xc4] ss:$8 sps:$4 sm:$0x7f]   ;;  %v2476_v48 = vld [vmem:[%s3066_s2 + $0x50] sm:$0xff]  }
 0x924   :  { %2155 = vmatmul.mubr.msk.bf16.vlgmr.msra.gmra.mrb[12].mxu0 %vm41_vm1, %v692_v49  ;;  %2182 = vmatprep.subr.msk.bf16.mxu1 %vm48_vm0, %v2443_v3  ;;  %v1273_v25 = vsel %vm48_vm0, %v2457_v19, 0  ;;  %v1068_v35 = vrot.slane %v2807_v2, 6  ;;  %v2477_v3 = vld [vmem:[%s3066_s2 + $0x10] sm:$0xff]   ;;  %v2480_v49 = vld [vmem:[%s3066_s2 + $0x60] sm:$0xff]  }
 0x925   :  { %831 = vmatpush1.bf16.msra.mxu0 %v825_v46  ;;  %862 = vmatprep.mubr.bf16.mxu0 %v2573_v36  ;;  %v683_v26 = vadd.f32 %v2796_v61, %v678_v28  ;;  %v682_v34 = vadd.f32 %v2796_v61, %v677_v29  ;;  %v1465_v61 = vsel %vm48_vm0, %v2466_v56, 0  ;;  %v2481_v46 = vld [vmem:[%s3066_s2 + $0x20] sm:$0xff]  }
 0x926   :  { %2176 = vmatprep.subr.msk.bf16.mxu0 %vm48_vm0, %v2440_v5  ;;  %v2482_v5 = vld [vmem:[%s3066_s2 + $0x68] sm:$0xff]  }
 0x927   :  { %v685_v39 = vpack.c.bf16 %v683_v26, %v682_v34 }
 0x929   :  { %v1260_v43 = vrot.slane %v685_v39, 1  ;;  %v1388_v57 = vrot.slane %v685_v39, 3  ;;  %v1324_v60 = vrot.slane %v685_v39, 2  ;;  %v1516_v44 = vrot.slane %v685_v39, 5 }
 0x92a   :  { %2171 = vmatmul.mubr.msk.bf16.vlgmr.msra.gmra.mrb[16].mxu1 %vm41_vm1, %v876_v55  ;;  %v1452_v0 = vrot.slane %v685_v39, 4  ;;  %v1644_v42 = vrot.slane %v685_v39, 7  ;;  %v1580_v2 = vrot.slane %v685_v39, 6  ;;  %v2485_v55 = vld [vmem:[%s3066_s2 + $0x30] sm:$0xff]  }
 0x92b   :  { %1023 = vmatpush1.bf16.msra.mxu1 %v1017_v10  ;;  %1054 = vmatprep.mubr.bf16.mxu1 %v2573_v36  ;;  %v2486_v10 = vld [vmem:[%s3066_s2 + $0x78] sm:$0xff]  }
 0x92c   :  { %2165 = vmatmul.mubr.msk.bf16.vlgmr.msra.gmra.mrb[16].mxu0 %vm41_vm1, %v812_v11  ;;  %2194 = vmatprep.subr.msk.bf16.mxu1 %vm48_vm0, %v2449_v6  ;;  %v2487_v6 = vld [vmem:[%s3066_s2 + $0x38] sm:$0xff]   ;;  %v2488_v11 = vld [vmem:[%s3066_s2 + $0x80] sm:$0xff]  }
 0x92d   :  { %959 = vmatpush1.bf16.msra.mxu0 %v953_v14  ;;  %990 = vmatprep.mubr.bf16.mxu0 %v2573_v36  ;;  %v2489_v14 = vld [vmem:[%s3066_s2 + $0x40] sm:$0xff]  }
 0x92e   :  { %2188 = vmatprep.subr.msk.bf16.mxu0 %vm48_vm0, %v2446_v15  ;;  %v2490_v15 = vld [vmem:[%s3066_s2 + $0x88] sm:$0xff]  }
 0x932   :  { %2183 = vmatmul.mubr.msk.bf16.vlgmr.msra.gmra.mrb[20].mxu1 %vm41_vm1, %v1004_v20 }
 0x933   :  { %1151 = vmatpush1.bf16.msra.mxu1 %v1145_v21  ;;  %1182 = vmatprep.mubr.bf16.mxu1 %v2573_v36 }
 0x934   :  { %2177 = vmatmul.mubr.msk.bf16.vlgmr.msra.gmra.mrb[20].mxu0 %vm41_vm1, %v940_v23  ;;  %2206 = vmatprep.subr.msk.bf16.mxu1 %vm48_vm0, %v2455_v13 }
 0x935   :  { %1087 = vmatpush1.bf16.msra.mxu0 %v1081_v24  ;;  %1118 = vmatprep.mubr.bf16.mxu0 %v2573_v36 }
 0x936   :  { %2200 = vmatprep.subr.msk.bf16.mxu0 %vm48_vm0, %v2452_v27 }
 0x93a   :  { %2195 = vmatmul.mubr.msk.bf16.vlgmr.msra.gmra.mrb[24].mxu1 %vm41_vm1, %v1132_v31 }
 0x93b   :  { %1279 = vmatpush1.bf16.msra.mxu1 %v1273_v25  ;;  %1310 = vmatprep.mubr.bf16.mxu1 %v2573_v36 }
 0x93c   :  { %2189 = vmatmul.mubr.msk.bf16.vlgmr.msra.gmra.mrb[24].mxu0 %vm41_vm1, %v1068_v35  ;;  %2218 = vmatprep.subr.msk.bf16.mxu1 %vm48_vm0, %v2461_v33 }
 0x93d   :  { %1214 = vmatpush1.bf16.msra.mxu0 %v1208_v37  ;;  %1245 = vmatprep.mubr.bf16.mxu0 %v2573_v36 }
 0x93e   :  { %2212 = vmatprep.subr.msk.bf16.mxu0 %vm48_vm0, %v2458_v38 }
 0x942   :  { %2207 = vmatmul.mubr.msk.bf16.vlgmr.msra.gmra.mrb[28].mxu1 %vm41_vm1, %v1260_v43 }
 0x943   :  { %1407 = vmatpush1.bf16.msra.mxu1 %v1401_v45  ;;  %1438 = vmatprep.mubr.bf16.mxu1 %v2573_v36 }
 0x944   :  { %2201 = vmatmul.mubr.msk.bf16.vlgmr.msra.gmra.mrb[28].mxu0 %vm41_vm1, %v685_v39  ;;  %2230 = vmatprep.subr.msk.bf16.mxu1 %vm48_vm0, %v2467_v51 }
 0x945   :  { %1343 = vmatpush1.bf16.msra.mxu0 %v1337_v52  ;;  %1374 = vmatprep.mubr.bf16.mxu0 %v2573_v36 }
 0x946   :  { %2224 = vmatprep.subr.msk.bf16.mxu0 %vm48_vm0, %v2464_v53 }
 0x94a   :  { %2219 = vmatmul.mubr.msk.bf16.vlgmr.msra.gmra.mrb[32].mxu1 %vm41_vm1, %v1388_v57 }
 0x94b   :  { %1535 = vmatpush1.bf16.msra.mxu1 %v1529_v58  ;;  %1566 = vmatprep.mubr.bf16.mxu1 %v2573_v36 }
 0x94c   :  { %2213 = vmatmul.mubr.msk.bf16.vlgmr.msra.gmra.mrb[32].mxu0 %vm41_vm1, %v1324_v60  ;;  %2242 = vmatprep.subr.msk.bf16.mxu1 %vm48_vm0, %v2473_v59 }
 0x94d   :  { %1471 = vmatpush1.bf16.msra.mxu0 %v1465_v61  ;;  %1502 = vmatprep.mubr.bf16.mxu0 %v2573_v36 }
 0x94e   :  { %2236 = vmatprep.subr.msk.bf16.mxu0 %vm48_vm0, %v2470_v62 }
 0x952   :  { %2231 = vmatmul.mubr.msk.bf16.vlgmr.msra.gmra.mrb[36].mxu1 %vm41_vm1, %v1516_v44 }
 0x953   :  { %1663 = vmatpush1.bf16.msra.mxu1 %v1657_v47  ;;  %1694 = vmatprep.mubr.bf16.mxu1 %v2573_v36 }
 0x954   :  { %2225 = vmatmul.mubr.msk.bf16.vlgmr.msra.gmra.mrb[36].mxu0 %vm41_vm1, %v1452_v0 }
 0x955   :  { %1599 = vmatpush1.bf16.msra.mxu0 %v1593_v1  ;;  %1630 = vmatprep.mubr.bf16.mxu0 %v2573_v36  ;;  %v2478_v36 = vld [vmem:[%s3066_s2 + $0x58] sm:$0xff]  }
 0x956   :  { %2294 = vmatprep.subr.bf16.mxu0 %v2476_v48 }
 0x95a   :  { %2243 = vmatmul.mubr.msk.bf16.vlgmr.msra.gmra.mrb[40].mxu1 %vm41_vm1, %v1644_v42 }
 0x95c   :  { %2237 = vmatmul.mubr.msk.bf16.vlgmr.msra.gmra.mrb[40].mxu0 %vm41_vm1, %v1580_v2 }
 0x95d   :  { %2295 = vmatpush3.bf16.msra.mxu0 %v2477_v3 }
 0x95e   :  { %2296 = vmatprep.subr.bf16.mxu0 %v2478_v36 }
 0x961   :  { %2297 = vmatpush3.bf16.msra.mxu0 %v2479_v4 }
 0x962   :  { %2298 = vmatprep.subr.bf16.mxu0 %v2480_v49 }
 0x965   :  { %2299 = vmatpush3.bf16.msra.mxu0 %v2481_v46 }
 0x966   :  { %2300 = vmatprep.subr.bf16.mxu0 %v2482_v5 }
 0x969   :  { %2301 = vmatpush3.bf16.msra.mxu0 %v2483_v7 }
 0x96a   :  { %2302 = vmatprep.subr.bf16.mxu0 %v2484_v8 }
 0x96d   :  { %2303 = vmatpush3.bf16.msra.mxu0 %v2485_v55 }
 0x96e   :  { %2304 = vmatprep.subr.bf16.mxu0 %v2486_v10 }
 0x971   :  { %2305 = vmatpush3.bf16.msra.mxu0 %v2487_v6 }
 0x972   :  { %2306 = vmatprep.subr.bf16.mxu0 %v2488_v11 }
 0x975   :  { %2307 = vmatpush3.bf16.msra.mxu0 %v2489_v14 }
 0x976   :  { %2308 = vmatprep.subr.bf16.mxu0 %v2490_v15 }
 0x979   :  { %2309 = vmatpush3.bf16.msra.mxu0 %v2491_v16 }
 0x9f5   :  { %v802_v9 = vpop.f32.mrb[12].mxu1 }
 0x9f6   :  { %v804_v17 = vpop.f32.mrb[13].mxu1 }
 0x9f7   :  { %v744_v12 = vpop.f32.mrb[12].mxu0  ;;  %v806_v18 = vpop.f32.mrb[14].mxu1 }
 0x9f8   :  { %v803_v20 = vadd.f32 %v802_v9, %v744_v12  ;;  %v746_v21 = vpop.f32.mrb[13].mxu0  ;;  %v807_v13 = vpop.f32.mrb[15].mxu1 }
 0x9f9   :  { %v805_v22 = vadd.f32 %v804_v17, %v746_v21  ;;  %v748_v23 = vpop.f32.mrb[14].mxu0 }
 0x9fa   :  { %v749_v24 = vpop.f32.mrb[15].mxu0 }
 0x9fd   :  { %v928_v27 = vpop.f32.mrb[16].mxu1 }
 0x9fe   :  { %v930_v28 = vpop.f32.mrb[17].mxu1 }
 0x9ff   :  { %v864_v19 = vpop.f32.mrb[16].mxu0  ;;  %v932_v29 = vpop.f32.mrb[18].mxu1 }
 0xa00   :  { %v871_v30 = vadd.f32 %v864_v19, %v803_v20  ;;  %v866_v26 = vpop.f32.mrb[17].mxu0  ;;  %v933_v31 = vpop.f32.mrb[19].mxu1 }
 0xa01   :  { %v872_v25 = vadd.f32 %v866_v26, %v805_v22  ;;  %v868_v33 = vpop.f32.mrb[18].mxu0 }
 0xa02   :  { %v869_v34 = vpop.f32.mrb[19].mxu0  ;;  %v935_v35 = vadd.f32 %v928_v27, %v871_v30 }
 0xa03   :  { %v936_v37 = vadd.f32 %v930_v28, %v872_v25  ;;  %v1710_v34 = vsub.s32 0, %v2663_v32 }
 0xa05   :  { %v1056_v38 = vpop.f32.mrb[20].mxu1 }
 0xa06   :  { %v1058_v39 = vpop.f32.mrb[21].mxu1 }
 0xa07   :  { %v992_v40 = vpop.f32.mrb[20].mxu0  ;;  %v1060_v41 = vpop.f32.mrb[22].mxu1 }
 0xa08   :  { %v999_v43 = vadd.f32 %v992_v40, %v935_v35  ;;  %v994_v45 = vpop.f32.mrb[21].mxu0  ;;  %v1061_v51 = vpop.f32.mrb[23].mxu1 }
 0xa09   :  { %v1000_v52 = vadd.f32 %v994_v45, %v936_v37  ;;  %v996_v53 = vpop.f32.mrb[22].mxu0  ;;  %v2244_v37 = vld [vmem:[%s3065_s1 + $0x44] ss:$8 sm:$0x3] }
 0xa0a   :  { %v997_v54 = vpop.f32.mrb[23].mxu0  ;;  %v1063_v56 = vadd.f32 %v1056_v38, %v999_v43  ;;  %v1714_v38 = vsub.s32 1, %v2663_v32  ;;  %v1711_v45 = vrot.slane %v2244_v37, %v1710_v34  ;;  %v2492_v32 = vld [vmem:[%s3066_s2 + $0x90] sm:$0xff]  }
 0xa0b   :  { %v1064_v57 = vadd.f32 %v1058_v39, %v1000_v52 }
 0xa0c   :  { %v1715_v54 = vrot.slane %v2244_v37, %v1714_v38  ;;  %v2050_v37 = vld [vmem:[%s3065_s1 + $0x50] ss:$0 sm:$0xff] }
 0xa0d   :  { %v1184_v58 = vpop.f32.mrb[24].mxu1 }
 0xa0e   :  { %v1186_v59 = vpop.f32.mrb[25].mxu1 }
 0xa0f   :  { %v1120_v60 = vpop.f32.mrb[24].mxu0  ;;  %v1188_v61 = vpop.f32.mrb[26].mxu1 }
 0xa10   :  { %v1127_v62 = vadd.f32 %v1120_v60, %v1063_v56  ;;  %v1122_v63 = vpop.f32.mrb[25].mxu0  ;;  %v1189_v50 = vpop.f32.mrb[27].mxu1 }
 0xa11   :  { %v1128_v44 = vadd.f32 %v1122_v63, %v1064_v57  ;;  %v1124_v47 = vpop.f32.mrb[26].mxu0 }
 0xa12   :  { %v1125_v0 = vpop.f32.mrb[27].mxu0  ;;  %v1191_v1 = vadd.f32 %v1184_v58, %v1127_v62  ;;  %v2574_v47 = vmov 0.0  }
 0xa13   :  { %v1192_v42 = vadd.f32 %v1186_v59, %v1128_v44  ;;  %2371 = vmatprep.subr.bf16.mxu1 %v2574_v47  ;;  %v2493_v0 = vld [vmem:[%s3066_s2 + $0x98] sm:$0xff]   ;;  %2375 = vmatprep.mubr.msk.bf16.mxu1 %vm2575_vm9, %v2574_v47 }
 0xa14   :  { %2372 = vmatpush3.bf16.msra.mxu1 %v2492_v32 }
 0xa15   :  { %v1312_v2 = vpop.f32.mrb[28].mxu1  ;;  %2373 = vmatprep.subr.bf16.mxu1 %v2574_v47 }
 0xa16   :  { %v1314_v48 = vpop.f32.mrb[29].mxu1 }
 0xa17   :  { %v1247_v3 = vpop.f32.mrb[28].mxu0  ;;  %v1316_v36 = vpop.f32.mrb[30].mxu1 }
 0xa18   :  { %v1254_v4 = vadd.f32 %v1247_v3, %v1191_v1  ;;  %v1249_v49 = vpop.f32.mrb[29].mxu0  ;;  %v1317_v46 = vpop.f32.mrb[31].mxu1  ;;  %2374 = vmatpush3.bf16.msra.mxu1 %v2493_v0 }
 0xa19   :  { %v1255_v5 = vadd.f32 %v1249_v49, %v1192_v42  ;;  %v1251_v7 = vpop.f32.mrb[30].mxu0  ;;  %2379 = vmatprep.subr.bf16.mxu1 %v2574_v47  ;;  %v1756_v42 = vld [vmem:[%s3065_s1 + $0x45] ss:$0 sm:$0xff] }
 0xa1a   :  { %v1252_v8 = vpop.f32.mrb[31].mxu0  ;;  %v1319_v55 = vadd.f32 %v1312_v2, %v1254_v4  ;;  %v2494_v46 = vld [vmem:[%s3066_s2 + $0xa0] sm:$0xff]   ;;  %v2495_v7 = vld [vmem:[%s3066_s2 + $0xa8] sm:$0xff]  }
 0xa1b   :  { %v1320_v10 = vadd.f32 %v1314_v48, %v1255_v5  ;;  %v2496_v8 = vld [vmem:[%s3066_s2 + $0xb0] sm:$0xff]  }
 0xa1d   :  { %v1440_v6 = vpop.f32.mrb[32].mxu1 }
 0xa1e   :  { %v1442_v11 = vpop.f32.mrb[33].mxu1 }
 0xa1f   :  { %v1376_v14 = vpop.f32.mrb[32].mxu0  ;;  %v1444_v15 = vpop.f32.mrb[34].mxu1 }
 0xa20   :  { %v1383_v16 = vadd.f32 %v1376_v14, %v1319_v55  ;;  %v1378_v9 = vpop.f32.mrb[33].mxu0  ;;  %v1445_v17 = vpop.f32.mrb[35].mxu1  ;;  %v2497_v55 = vld [vmem:[%s3066_s2 + $0xb8] sm:$0xff]  }
 0xa21   :  { %v1384_v12 = vadd.f32 %v1378_v9, %v1320_v10  ;;  %v1380_v18 = vpop.f32.mrb[34].mxu0  ;;  %v1899_v10 = vld [vmem:[%s3065_s1 + $0x46] ss:$0 sm:$0xff] }
 0xa22   :  { %v1381_v20 = vpop.f32.mrb[35].mxu0  ;;  %v1447_v21 = vadd.f32 %v1440_v6, %v1383_v16 }
 0xa23   :  { %v1448_v13 = vadd.f32 %v1442_v11, %v1384_v12  ;;  %v1965_v12 = vld [vmem:[%s3065_s1 + $0x47] ss:$0 sm:$0xff] }
 0xa25   :  { %v1568_v22 = vpop.f32.mrb[36].mxu1 }
 0xa26   :  { %v1570_v23 = vpop.f32.mrb[37].mxu1 }
 0xa27   :  { %v1504_v24 = vpop.f32.mrb[36].mxu0  ;;  %v1572_v27 = vpop.f32.mrb[38].mxu1 }
 0xa28   :  { %v1511_v28 = vadd.f32 %v1504_v24, %v1447_v21  ;;  %v1506_v19 = vpop.f32.mrb[37].mxu0  ;;  %v1573_v29 = vpop.f32.mrb[39].mxu1 }
 0xa29   :  { %v1512_v30 = vadd.f32 %v1506_v19, %v1448_v13  ;;  %v1508_v26 = vpop.f32.mrb[38].mxu0 }
 0xa2a   :  { %v1509_v31 = vpop.f32.mrb[39].mxu0  ;;  %v1575_v25 = vadd.f32 %v1568_v22, %v1511_v28  ;;  %v2498_v26 = vld [vmem:[%s3066_s2 + $0xc0] sm:$0xff]  }
 0xa2b   :  { %v1576_v33 = vadd.f32 %v1570_v23, %v1512_v30  ;;  %v2499_v31 = vld [vmem:[%s3066_s2 + $0xc8] sm:$0xff]  }
 0xa2d   :  { %v1696_v35 = vpop.f32.mrb[40].mxu1 }
 0xa2e   :  { %v1698_v39 = vpop.f32.mrb[41].mxu1 }
 0xa2f   :  { %v1632_v40 = vpop.f32.mrb[40].mxu0  ;;  %v1700_v41 = vpop.f32.mrb[42].mxu1 }
 0xa30   :  { %v1639_v43 = vadd.f32 %v1632_v40, %v1575_v25  ;;  %v1634_v51 = vpop.f32.mrb[41].mxu0  ;;  %v1701_v52 = vpop.f32.mrb[43].mxu1 }
 0xa31   :  { %v1640_v53 = vadd.f32 %v1634_v51, %v1576_v33  ;;  %v1636_v56 = vpop.f32.mrb[42].mxu0 }
 0xa32   :  { %v1703_v57 = vadd.f32 %v1696_v35, %v1639_v43  ;;  %v1637_v58 = vpop.f32.mrb[43].mxu0 }
 0xa33   :  { %v1704_v59 = vadd.f32 %v1698_v39, %v1640_v53  ;;  %v2052_v39 = vld [vmem:[%s3065_s1 + $0x51] ss:$0 sm:$0xff] }
 0xa34   :  { %v1718_v60 = vadd.f32 %v1711_v45, %v1703_v57  ;;  %v2059_v45 = vld [vmem:[%s3065_s1 + $0x52] ss:$0 sm:$0xff] }
 0xa35   :  { %v1719_v61 = vadd.f32 %v1715_v54, %v1704_v59 }
 0xa36   :  { %v1720_v62 = vmax.f32 %v1718_v60, 0.0 }
 0xa37   :  { %v1721_v63 = vmax.f32 %v1719_v61, 0.0 }
 0xa38   :  { %v1754_v44 = vpack.c.bf16 %v1720_v62, %v1720_v62 }
 0xa39   :  { %v1755_v50 = vpack.c.bf16 %v1721_v63, %v1721_v63 }
 0xa3b   :  { %1885 = vmatprep.mubr.bf16.mxu0 %v1755_v50 }
 0xa3c   :  { %1886 = vmatmul.mubr.bf16.vlgmr.msra.gmra.mrb[44].mxu0 %v1754_v44 }
 0xb0f   :  { %v2310_v1 = vpop.f32.mrb[44].mxu0 }
 0xb10   :  { %v2311_v2 = vpop.f32.mrb[45].mxu0 }
 0xb11   :  { %v2312_v48 = vadd.f32 %v2311_v2, %v2310_v1  ;;  %v2313_v3 = vpop.f32.mrb[46].mxu0 }
 0xb12   :  { %v2314_v36 = vpop.f32.mrb[47].mxu0 }
 0xb13   :  { %v1888_v4 = vadd.f32 %v2312_v48, %v1756_v42 }
 0xb15   :  { %v1893_v49 = vmax.f32 %v1888_v4, 0.0 }
 0xb17   :  { %v1898_v5 = vpack.c.bf16 %v1893_v49, %v1893_v49 }
 0xb19   :  { %2376 = vmatmul.mubr.msk.bf16.vlgmr.msra.gmra.mrb[44].mxu1 %vm246_vm6, %v1898_v5 }
 0xb1a   :  { %2380 = vmatpush3.bf16.msra.mxu1 %v2494_v46  ;;  %2387 = vmatprep.mubr.msk.bf16.mxu1 %vm2575_vm9, %v2574_v47 }
 0xb1b   :  { %2381 = vmatprep.subr.bf16.mxu1 %v2574_v47 }
 0xb1e   :  { %2382 = vmatpush3.bf16.msra.mxu1 %v2495_v7 }
 0xb1f   :  { %2383 = vmatprep.subr.bf16.mxu1 %v2574_v47 }
 0xb22   :  { %2384 = vmatpush3.bf16.msra.mxu1 %v2496_v8 }
 0xb23   :  { %2385 = vmatprep.subr.bf16.mxu1 %v2574_v47 }
 0xb26   :  { %2386 = vmatpush3.bf16.msra.mxu1 %v2497_v55 }
 0xb27   :  { %2391 = vmatprep.subr.bf16.mxu1 %v2574_v47 }
 0xbec   :  { %v1949_v6 = vpop.f32.mrb[44].mxu1 }
 0xbed   :  { %v1950_v11 = vadd.f32 %v1949_v6, %v1899_v10  ;;  %v2377_v14 = vpop.f32.mrb[45].mxu1 }
 0xbee   :  { %v1952_v15 = vpop.f32.mrb[46].mxu1 }
 0xbef   :  { %v1955_v16 = vmax.f32 %v1950_v11, 0.0  ;;  %v2378_v9 = vpop.f32.mrb[47].mxu1 }
 0xbf1   :  { %v1964_v17 = vpack.c.bf16 %v1955_v16, %v1955_v16 }
 0xbf3   :  { %2388 = vmatmul.mubr.msk.bf16.vlgmr.msra.gmra.mrb[48].mxu1 %vm1990_vm10, %v1964_v17 }
 0xbf4   :  { %2395 = vmatprep.mubr.msk.bf16.mxu1 %vm2575_vm9, %v2574_v47  ;;  %2392 = vmatpush3.bf16.msra.mxu1 %v2498_v26 }
 0xbf5   :  { %2393 = vmatprep.subr.bf16.mxu1 %v2574_v47 }
 0xbf8   :  { %2394 = vmatpush3.bf16.msra.mxu1 %v2499_v31 }
 0xcc6   :  { %v2028_v18 = vpop.f32.mrb[48].mxu1 }
 0xcc7   :  { %v2029_v20 = vadd.f32 %v2028_v18, %v1965_v12  ;;  %v2389_v21 = vpop.f32.mrb[49].mxu1 }
 0xcc8   :  { %v2031_v13 = vpop.f32.mrb[50].mxu1 }
 0xcc9   :  { %v2390_v22 = vpop.f32.mrb[51].mxu1  ;;  %v2034_v23 = vadd.f32 %v2029_v20, %v1893_v49 }
 0xccb   :  { %v2036_v24 = vsel %vm2035_vm11, %v2034_v23, 0.0 }
 0xccc   :  { %2037 = vadd.xlane.f32.xlu1 %v2036_v24 }
 0xd59   :  { %v2038_v27 = vpop.xlane.xlu1 %2037 }
 0xd5a   :  { %v2040_v28 = vmul.f32 0.03125, %v2038_v27 }
 0xd5c   :  { %v2041_v19 = vsub.f32 %v2034_v23, %v2040_v28 }
 0xd5e   :  { %v2042_v29 = vmul.f32 %v2041_v19, %v2041_v19 }
 0xd60   :  { %v2043_v30 = vsel %vm2035_vm11, %v2042_v29, 0.0 }
 0xd61   :  { %2044 = vadd.xlane.f32.xlu0 %v2043_v30 }
 0xdee   :  { %v2045_v25 = vpop.xlane.xlu0 %2044 }
 0xdef   :  { %v2046_v33 = vmul.f32 0.03125, %v2045_v25 }
 0xdf1   :  { %v2047_v34 = vadd.f32 1e-05, %v2046_v33 }
 0xdf3   :  { %2540 = vrsqrt.f32 %v2047_v34 }
 0xdfd   :  { %v2541_v35 = vpop.eup %2540 }
 0xdfe   :  { %v2049_v38 = vmul.f32 %v2541_v35, %v2041_v19 }
 0xe00   :  { %v2051_v40 = vmul.f32 %v2050_v37, %v2049_v38 }
 0xe02   :  { %v2053_v41 = vadd.f32 %v2052_v39, %v2051_v40 }
 0xe04   :  { %v2058_v43 = vpack.c.bf16 %v2053_v41, %v2053_v41 }
 0xe06   :  { %2396 = vmatmul.mubr.msk.bf16.vlgmr.msra.gmra.mrb[52].mxu1 %vm246_vm6, %v2058_v43 }
 0xed9   :  { %v2109_v51 = vpop.f32.mrb[52].mxu1 }
 0xeda   :  { %v2110_v52 = vadd.f32 %v2109_v51, %v2059_v45  ;;  %v2397_v53 = vpop.f32.mrb[53].mxu1 }
 0xedb   :  { %v2112_v54 = vpop.f32.mrb[54].mxu1 }
 0xedc   :  { %2116 = vrot.lane.b32.xlu1 %v2110_v52, %s2576_s9  ;;  %v2398_v56 = vpop.f32.mrb[55].mxu1 }
 0xf4e   :  { %v2117_v57 = vpop.permute.xlu1 %2116 }
 0xf4f   :  { %v2119_v58 = vsel %vm246_vm6, %v2053_v41, %v2117_v57 }
 0xf50   :  { %2121 = vst.msk [vmem:[#allocation2] sm:$0x3] %vm2120_vm12, %v2119_v58 }
 0xf51   :  { %2553 = shalt.err (!%p2550_p4)
}
 0xf52   :  { %s2554_s14 = scalar_lea.hbm %s3068_s4, 32 }
 0xf53   :  { %p2555_p5 = scmp.ne.s32.totalorder %s3068_s4, %s2554_s14  ;;  %p2558_p6 = scmp.lt.u32.totalorder %s2554_s14, %s3068_s4 }
 0xf55   :  { %p2560_p7 = pnand %p2558_p6, %p2555_p5 }
 0xf57   :  { %2563 = shalt.err (!%p2560_p7)
}
 0xf58   :  { %2131 = dma.vmem_to_hbm [thread:$0]  %s2129_s11, 32, %s3068_s4, [#allocation3]  }
 0xf59   :  { %2564 = dma.done.wait [#allocation3], 32  }
 0xf5a   :  { %2565 = vsyncadd [#allocation3], 4294967264 }
 0xf5b   :  { %2135 = vsyncpa [#allocation3], 1 }

</bundles_post_ra>
